<compile_context>
chip_gen: v7x
topology: tpu7x:2x2x1
jax: 0.10.0
libtpu: 0.0.40
codegen_flags: <defaults>
</compile_context>

<pallas_src>
import functools
import math

import jax
import jax.numpy as jnp
from jax.experimental import pallas as pl
from jax.experimental.pallas import tpu as pltpu


def _round_up(x, m):
    return (x + m - 1) // m * m


# ----------------------------------------------------------------------------
# Kernels
# ----------------------------------------------------------------------------
def patch_embed_kernel(p_ref, w_ref, b_ref, o_ref):
    # p_ref: (TM, K) bf16, w_ref: (K, D) bf16, b_ref: (1, D) f32 -> (TM, D) f32
    o_ref[...] = (
        jnp.dot(p_ref[...], w_ref[...], preferred_element_type=jnp.float32)
        + b_ref[...]
    )


def encoder_stack_kernel(
    x_ref, ln1g_ref, ln1b_ref, wqkv_ref, bqkv_ref, wo_ref, bo_ref,
    ln2g_ref, ln2b_ref, w1_ref, b1_ref, w2_ref, b2_ref, o_ref,
    *, num_heads, seq_real, mlp_chunk,
):
    # grid = (B, depth); one (1, S_pad, D) activation block per batch element,
    # kept resident in the output block across the (inner, "arbitrary") depth
    # axis while the per-layer weights are streamed in.
    d_idx = pl.program_id(1)

    @pl.when(d_idx == 0)
    def _():
        o_ref[...] = x_ref[...]          # load layer-0 input into the resident block

    x = o_ref[0]                         # (S_pad, D) f32 activation of layer d
    S_pad, D = x.shape
    H = num_heads
    hd = D // H
    eps = 1e-5
    bf16 = jnp.bfloat16

    # ---- LayerNorm 1 (f32) ----
    mu = jnp.mean(x, axis=-1, keepdims=True)
    var = jnp.mean(jnp.square(x - mu), axis=-1, keepdims=True)
    xn = (x - mu) * jax.lax.rsqrt(var + eps) * ln1g_ref[0] + ln1b_ref[0]

    # ---- Fused QKV projection: one (S,D)x(D,3D) MXU pass ----
    qkv = (
        jnp.dot(xn.astype(bf16), wqkv_ref[0], preferred_element_type=jnp.float32)
        + bqkv_ref[0]
    )
    q = qkv[:, :D]
    k = qkv[:, D:2 * D]
    v = qkv[:, 2 * D:]

    scale = 1.0 / math.sqrt(hd)
    if seq_real < S_pad:                 # mask the zero-padded key positions
        key_mask = (
            jax.lax.broadcasted_iota(jnp.int32, (S_pad, S_pad), 1) < seq_real
        )
    else:
        key_mask = None

    # ---- Multi-head self-attention ----
    # TODO(synk): a head-batched dot_general needs a (S,H,hd)->(H,S,hd)
    # relayout that Mosaic does not lower cleanly; per-head 2-D matmuls kept.
    head_outs = []
    for h in range(H):
        qh = q[:, h * hd:(h + 1) * hd].astype(bf16)
        kh = k[:, h * hd:(h + 1) * hd].astype(bf16)
        vh = v[:, h * hd:(h + 1) * hd].astype(bf16)
        s = jnp.dot(qh, kh.T, preferred_element_type=jnp.float32) * scale
        if key_mask is not None:
            s = jnp.where(key_mask, s, -1e30)
        s = s - jnp.max(s, axis=-1, keepdims=True)
        p_att = jnp.exp(s)
        p_att = p_att * pl.reciprocal(
            jnp.sum(p_att, axis=-1, keepdims=True), approx=True)
        head_outs.append(
            jnp.dot(p_att.astype(bf16), vh, preferred_element_type=jnp.float32))
    attn = jnp.concatenate(head_outs, axis=-1)                 # (S_pad, D) f32
    attn = (
        jnp.dot(attn.astype(bf16), wo_ref[0], preferred_element_type=jnp.float32)
        + bo_ref[0]
    )
    x = x + attn                                               # residual 1

    # ---- LayerNorm 2 + MLP (chunked over sequence rows) ----
    n_chunks = S_pad // mlp_chunk
    for ci in range(n_chunks):
        lo = ci * mlp_chunk
        xc = x if n_chunks == 1 else x[lo:lo + mlp_chunk]
        mu2 = jnp.mean(xc, axis=-1, keepdims=True)
        var2 = jnp.mean(jnp.square(xc - mu2), axis=-1, keepdims=True)
        xn2 = (xc - mu2) * jax.lax.rsqrt(var2 + eps) * ln2g_ref[0] + ln2b_ref[0]
        h1 = (
            jnp.dot(xn2.astype(bf16), w1_ref[0],
                    preferred_element_type=jnp.float32)
            + b1_ref[0]
        )
        h1 = jax.nn.gelu(h1, approximate=True)     # tanh GELU -> EUP slot
        h2 = (
            jnp.dot(h1.astype(bf16), w2_ref[0],
                    preferred_element_type=jnp.float32)
            + b2_ref[0]
        )
        y = xc + h2                                            # residual 2
        if n_chunks == 1:
            o_ref[0] = y
        else:
            o_ref[0, lo:lo + mlp_chunk, :] = y


def head_kernel(x_ref, g_ref, b_ref, w_ref, bias_ref, o_ref):
    # Final LayerNorm on the cls tokens + classifier (classes padded to 128).
    x = x_ref[...]
    mu = jnp.mean(x, axis=-1, keepdims=True)
    var = jnp.mean(jnp.square(x - mu), axis=-1, keepdims=True)
    xn = (x - mu) * jax.lax.rsqrt(var + 1e-5) * g_ref[...] + b_ref[...]
    o_ref[...] = (
        jnp.dot(xn.astype(jnp.bfloat16), w_ref[...],
                preferred_element_type=jnp.float32)
        + bias_ref[...]
    )


# ----------------------------------------------------------------------------
# pallas_call wrappers
# ----------------------------------------------------------------------------
def patch_embed(patches_bf16, w, b):
    BP, K = patches_bf16.shape
    D = w.shape[1]
    tile = 256
    if BP <= tile:
        tile = _round_up(BP, 8)
    BP_pad = _round_up(BP, tile)
    if BP_pad != BP:
        patches_bf16 = jnp.pad(patches_bf16, ((0, BP_pad - BP), (0, 0)))
    out = pl.pallas_call(
        patch_embed_kernel,
        out_shape=jax.ShapeDtypeStruct((BP_pad, D), jnp.float32),
        grid=(BP_pad // tile,),
        in_specs=[
            pl.BlockSpec((tile, K), lambda i: (i, 0)),
            pl.BlockSpec((K, D), lambda i: (0, 0)),
            pl.BlockSpec((1, D), lambda i: (0, 0)),
        ],
        out_specs=pl.BlockSpec((tile, D), lambda i: (i, 0)),
        compiler_params=pltpu.CompilerParams(
            dimension_semantics=("parallel",)),
    )(patches_bf16, w, b)
    return out[:BP]


def encoder_stack(x, blk, *, num_heads, seq_real):
    B, S_pad, D = x.shape
    depth = blk["wqkv"].shape[0]

    # MLP sequence-chunk size (only kicks in for long, evenly divisible S).
    chunk = S_pad
    for c in (512, 256, 128):
        if S_pad > c and S_pad % c == 0:
            chunk = c
            break

    names = ("ln1g", "ln1b", "wqkv", "bqkv", "wo", "bo",
             "ln2g", "ln2b", "w1", "b1", "w2", "b2")
    in_specs = [pl.BlockSpec((1, S_pad, D), lambda b, d: (b, 0, 0))]
    args = [x]
    for n in names:
        w = blk[n]
        in_specs.append(pl.BlockSpec((1,) + w.shape[1:],
                                     lambda b, d: (d, 0, 0)))
        args.append(w)

    kernel = functools.partial(
        encoder_stack_kernel, num_heads=num_heads, seq_real=seq_real,
        mlp_chunk=chunk)

    return pl.pallas_call(
        kernel,
        out_shape=jax.ShapeDtypeStruct((B, S_pad, D), jnp.float32),
        grid=(B, depth),
        in_specs=in_specs,
        out_specs=pl.BlockSpec((1, S_pad, D), lambda b, d: (b, 0, 0)),
        compiler_params=pltpu.CompilerParams(
            dimension_semantics=("parallel", "arbitrary"),
            vmem_limit_bytes=48 * 1024 * 1024,   # headroom for v7x's 64 MiB
        ),
    )(*args)


def classifier_head(cls_f32, ng, nb, w_pad_bf16, b_pad_f32):
    B, D = cls_f32.shape
    Cp = w_pad_bf16.shape[1]
    return pl.pallas_call(
        head_kernel,
        out_shape=jax.ShapeDtypeStruct((B, Cp), jnp.float32),
        grid=(1,),
        in_specs=[
            pl.BlockSpec((B, D), lambda i: (0, 0)),
            pl.BlockSpec((1, D), lambda i: (0, 0)),
            pl.BlockSpec((1, D), lambda i: (0, 0)),
            pl.BlockSpec((D, Cp), lambda i: (0, 0)),
            pl.BlockSpec((1, Cp), lambda i: (0, 0)),
        ],
        out_specs=pl.BlockSpec((B, Cp), lambda i: (0, 0)),
    )(cls_f32, ng, nb, w_pad_bf16, b_pad_f32)


# ----------------------------------------------------------------------------
# Parameter init (deterministic, synthetic) and full forward
# ----------------------------------------------------------------------------
def init_params(key, *, image_size, patch_size, in_channels, num_classes,
                embed_dim, depth, mlp_ratio):
    P = (image_size // patch_size) ** 2
    K = in_channels * patch_size * patch_size
    hidden = int(embed_dim * mlp_ratio)
    D = embed_dim

    keys = jax.random.split(key, 8)
    nrm = lambda k, shp, s=0.02: s * jax.random.normal(k, shp, jnp.float32)

    return {
        "patch_w": nrm(keys[0], (K, D)).astype(jnp.bfloat16),
        "patch_b": jnp.zeros((1, D), jnp.float32),
        "cls_token": jax.random.normal(keys[1], (1, 1, D), jnp.float32),
        "pos_embed": jax.random.normal(keys[2], (1, P + 1, D), jnp.float32),
        "norm_g": jnp.ones((1, D), jnp.float32),
        "norm_b": jnp.zeros((1, D), jnp.float32),
        "head_w": nrm(keys[3], (D, num_classes)),
        "head_b": jnp.zeros((1, num_classes), jnp.float32),
        "blocks": {   # per-layer weights stacked along a leading depth axis
            "ln1g": jnp.ones((depth, 1, D), jnp.float32),
            "ln1b": jnp.zeros((depth, 1, D), jnp.float32),
            "wqkv": nrm(keys[4], (depth, D, 3 * D)).astype(jnp.bfloat16),
            "bqkv": jnp.zeros((depth, 1, 3 * D), jnp.float32),
            "wo": nrm(keys[5], (depth, D, D)).astype(jnp.bfloat16),
            "bo": jnp.zeros((depth, 1, D), jnp.float32),
            "ln2g": jnp.ones((depth, 1, D), jnp.float32),
            "ln2b": jnp.zeros((depth, 1, D), jnp.float32),
            "w1": nrm(keys[6], (depth, D, hidden)).astype(jnp.bfloat16),
            "b1": jnp.zeros((depth, 1, hidden), jnp.float32),
            "w2": nrm(keys[7], (depth, hidden, D)).astype(jnp.bfloat16),
            "b2": jnp.zeros((depth, 1, D), jnp.float32),
        },
    }


def vit_forward(x, params, *, patch_size, num_heads):
    # x: [B, C, H, W] (NCHW, matching PyTorch)
    B, C, H, W = x.shape
    p = patch_size
    gh, gw = H // p, W // p
    P = gh * gw
    D = params["patch_w"].shape[1]

    # ---- patch extraction (glue) -> patch-embedding matmul (Pallas) ----
    patches = (
        x.reshape(B, C, gh, p, gw, p)
        .transpose(0, 2, 4, 1, 3, 5)          # [B, gh, gw, C, p, p]
        .reshape(B * P, C * p * p)
    ).astype(jnp.bfloat16)
    emb = patch_embed(patches, params["patch_w"], params["patch_b"])
    tokens = emb.reshape(B, P, D)

    # ---- cls token + positional embedding (glue, pure elementwise) ----
    cls_tok = jnp.broadcast_to(params["cls_token"], (B, 1, D))
    tokens = jnp.concatenate([cls_tok, tokens], axis=1) + params["pos_embed"]

    # ---- pad sequence to a sublane multiple (padded keys masked in-kernel) --
    S = P + 1
    S_pad = _round_up(S, 8)
    if S_pad != S:
        tokens = jnp.pad(tokens, ((0, 0), (0, S_pad - S), (0, 0)))

    # ---- transformer encoder stack: ONE fused pallas_call over (B, depth) ---
    tokens = encoder_stack(tokens, params["blocks"],
                           num_heads=num_heads, seq_real=S)

    # ---- final LayerNorm on cls token + classifier head (Pallas) ----
    cls_out = tokens[:, 0, :]
    n_cls = params["head_w"].shape[1]
    Cp = _round_up(n_cls, 128)                # lane-dense classifier output
    hw = jnp.pad(params["head_w"], ((0, 0), (0, Cp - n_cls))).astype(jnp.bfloat16)
    hb = jnp.pad(params["head_b"], ((0, 0), (0, Cp - n_cls)))
    logits = classifier_head(cls_out, params["norm_g"], params["norm_b"], hw, hb)
    return logits[:, :n_cls]                  # [B, num_classes]


# TODO(synk): dropout omitted (forward is eval-mode); PatchEmbedding /
# TransformerEncoder internals assumed (not provided in the reference snippet).

if __name__ == "__main__":
    # Small config consistent with the module's constructor signature.
    cfg = dict(
        image_size=16,
        patch_size=4,
        in_channels=3,
        num_classes=10,
        embed_dim=32,
        depth=2,
        num_heads=4,
        mlp_ratio=4.0,
    )
    B = 2

    key = jax.random.PRNGKey(0)
    pkey, xkey = jax.random.split(key)
    params = init_params(
        pkey,
        image_size=cfg["image_size"], patch_size=cfg["patch_size"],
        in_channels=cfg["in_channels"], num_classes=cfg["num_classes"],
        embed_dim=cfg["embed_dim"], depth=cfg["depth"],
        mlp_ratio=cfg["mlp_ratio"],
    )
    x = jax.random.normal(
        xkey, (B, cfg["in_channels"], cfg["image_size"], cfg["image_size"]),
        jnp.float32,
    )

    fwd = jax.jit(functools.partial(
        vit_forward, patch_size=cfg["patch_size"], num_heads=cfg["num_heads"]))
    logits = jax.block_until_ready(fwd(x, params))
    assert logits.shape == (B, cfg["num_classes"]), logits.shape
    assert bool(jnp.all(jnp.isfinite(logits)))
    print("KERNEL_OK")
</pallas_src>

<mosaic_0001>
module attributes {stable_mosaic.version = 11 : i64} {
  func.func @encoder_stack_kernel(%arg0: i32, %arg1: i32, %arg2: memref<1x24x32xf32, #tpu.memory_space<vmem>>, %arg3: memref<1x1x32xf32, #tpu.memory_space<vmem>>, %arg4: memref<1x1x32xf32, #tpu.memory_space<vmem>>, %arg5: memref<1x32x96xbf16, #tpu.memory_space<vmem>>, %arg6: memref<1x1x96xf32, #tpu.memory_space<vmem>>, %arg7: memref<1x32x32xbf16, #tpu.memory_space<vmem>>, %arg8: memref<1x1x32xf32, #tpu.memory_space<vmem>>, %arg9: memref<1x1x32xf32, #tpu.memory_space<vmem>>, %arg10: memref<1x1x32xf32, #tpu.memory_space<vmem>>, %arg11: memref<1x32x128xbf16, #tpu.memory_space<vmem>>, %arg12: memref<1x1x128xf32, #tpu.memory_space<vmem>>, %arg13: memref<1x128x32xbf16, #tpu.memory_space<vmem>>, %arg14: memref<1x1x32xf32, #tpu.memory_space<vmem>>, %arg15: memref<1x24x32xf32, #tpu.memory_space<vmem>>) attributes {dimension_semantics = [#tpu.dimension_semantics<parallel>, #tpu.dimension_semantics<arbitrary>], iteration_bounds = array<i64: 2, 2>, scalar_prefetch = 0 : i64, scratch_operands = 0 : i64, tpu.core_type = #tpu.core_type<tc>, window_params = [{transform_indices = @transform_0, window_bounds = array<i64: 1, 24, 32>}, {transform_indices = @transform_1, window_bounds = array<i64: 1, 1, 32>}, {transform_indices = @transform_2, window_bounds = array<i64: 1, 1, 32>}, {transform_indices = @transform_3, window_bounds = array<i64: 1, 32, 96>}, {transform_indices = @transform_4, window_bounds = array<i64: 1, 1, 96>}, {transform_indices = @transform_5, window_bounds = array<i64: 1, 32, 32>}, {transform_indices = @transform_6, window_bounds = array<i64: 1, 1, 32>}, {transform_indices = @transform_7, window_bounds = array<i64: 1, 1, 32>}, {transform_indices = @transform_8, window_bounds = array<i64: 1, 1, 32>}, {transform_indices = @transform_9, window_bounds = array<i64: 1, 32, 128>}, {transform_indices = @transform_10, window_bounds = array<i64: 1, 1, 128>}, {transform_indices = @transform_11, window_bounds = array<i64: 1, 128, 32>}, {transform_indices = @transform_12, window_bounds = array<i64: 1, 1, 32>}, {transform_indices = @transform_13, window_bounds = array<i64: 1, 24, 32>}]} {
    %c0_i32 = arith.constant 0 : i32
    %0 = arith.cmpi eq, %arg1, %c0_i32 : i32
    %1 = arith.extui %0 : i1 to i32
    %c0_i32_0 = arith.constant 0 : i32
    %2 = arith.cmpi ne, %1, %c0_i32_0 : i32
    scf.if %2 {
      %c0_83 = arith.constant 0 : index
      %c0_84 = arith.constant 0 : index
      %c0_85 = arith.constant 0 : index
      %210 = vector.load %arg2[%c0_83, %c0_84, %c0_85] : memref<1x24x32xf32, #tpu.memory_space<vmem>>, vector<1x24x32xf32>
      %c0_86 = arith.constant 0 : index
      %c0_87 = arith.constant 0 : index
      %c0_88 = arith.constant 0 : index
      %211 = vector.load %arg15[%c0_86, %c0_87, %c0_88] : memref<1x24x32xf32, #tpu.memory_space<vmem>>, vector<1x24x32xf32>
      tpu.vector_store %arg15[%c0_86, %c0_87, %c0_88], %210 {strides = array<i32>} : memref<1x24x32xf32, #tpu.memory_space<vmem>>, vector<1x24x32xf32>,
    } else {
    }
    %c0 = arith.constant 0 : index
    %c0_1 = arith.constant 0 : index
    %c0_2 = arith.constant 0 : index
    %3 = vector.load %arg15[%c0, %c0_1, %c0_2] : memref<1x24x32xf32, #tpu.memory_space<vmem>>, vector<1x24x32xf32>
    %4 = vector.shape_cast %3 : vector<1x24x32xf32> to vector<24x32xf32>
    %cst = arith.constant dense<0.000000e+00> : vector<24xf32>
    %5 = vector.multi_reduction <add>, %4, %cst [1] : vector<24x32xf32> to vector<24xf32>
    %6 = vector.shape_cast %5 : vector<24xf32> to vector<24x1xf32>
    %cst_3 = arith.constant 3.200000e+01 : f32
    %7 = vector.broadcast %cst_3 : f32 to vector<24x1xf32>
    %8 = arith.divf %6, %7 : vector<24x1xf32>
    %9 = vector.broadcast %8 : vector<24x1xf32> to vector<24x32xf32>
    %10 = arith.subf %4, %9 : vector<24x32xf32>
    %11 = arith.mulf %10, %10 : vector<24x32xf32>
    %cst_4 = arith.constant dense<0.000000e+00> : vector<24xf32>
    %12 = vector.multi_reduction <add>, %11, %cst_4 [1] : vector<24x32xf32> to vector<24xf32>
    %13 = vector.shape_cast %12 : vector<24xf32> to vector<24x1xf32>
    %cst_5 = arith.constant 3.200000e+01 : f32
    %14 = vector.broadcast %cst_5 : f32 to vector<24x1xf32>
    %15 = arith.divf %13, %14 : vector<24x1xf32>
    %16 = vector.broadcast %8 : vector<24x1xf32> to vector<24x32xf32>
    %17 = arith.subf %4, %16 : vector<24x32xf32>
    %cst_6 = arith.constant 9.99999974E-6 : f32
    %18 = vector.broadcast %cst_6 : f32 to vector<24x1xf32>
    %19 = arith.addf %15, %18 : vector<24x1xf32>
    %20 = math.rsqrt %19 : vector<24x1xf32>
    %21 = vector.broadcast %20 : vector<24x1xf32> to vector<24x32xf32>
    %22 = arith.mulf %17, %21 : vector<24x32xf32>
    %c0_7 = arith.constant 0 : index
    %c0_8 = arith.constant 0 : index
    %c0_9 = arith.constant 0 : index
    %23 = vector.load %arg3[%c0_7, %c0_8, %c0_9] : memref<1x1x32xf32, #tpu.memory_space<vmem>>, vector<1x1x32xf32>
    %24 = vector.shape_cast %23 : vector<1x1x32xf32> to vector<1x32xf32>
    %25 = vector.broadcast %24 : vector<1x32xf32> to vector<24x32xf32>
    %26 = arith.mulf %22, %25 : vector<24x32xf32>
    %c0_10 = arith.constant 0 : index
    %c0_11 = arith.constant 0 : index
    %c0_12 = arith.constant 0 : index
    %27 = vector.load %arg4[%c0_10, %c0_11, %c0_12] : memref<1x1x32xf32, #tpu.memory_space<vmem>>, vector<1x1x32xf32>
    %28 = vector.shape_cast %27 : vector<1x1x32xf32> to vector<1x32xf32>
    %29 = vector.broadcast %28 : vector<1x32xf32> to vector<24x32xf32>
    %30 = arith.addf %26, %29 : vector<24x32xf32>
    %31 = arith.truncf %30 : vector<24x32xf32> to vector<24x32xbf16>
    %c0_13 = arith.constant 0 : index
    %c0_14 = arith.constant 0 : index
    %c0_15 = arith.constant 0 : index
    %32 = vector.load %arg5[%c0_13, %c0_14, %c0_15] : memref<1x32x96xbf16, #tpu.memory_space<vmem>>, vector<1x32x96xbf16>
    %33 = vector.shape_cast %32 : vector<1x32x96xbf16> to vector<32x96xbf16>
    %cst_16 = arith.constant dense<0.000000e+00> : vector<24x96xf32>
    %34 = tpu.matmul %31, %33, %cst_16 {dimension_numbers = #tpu.dot_dimension_numbers<[1], [0], [0], [1], [0, 0, 1, 1], [], []>} : vector<24x32xbf16>, vector<32x96xbf16>, vector<24x96xf32> -> vector<24x96xf32>
    %c0_17 = arith.constant 0 : index
    %c0_18 = arith.constant 0 : index
    %c0_19 = arith.constant 0 : index
    %35 = vector.load %arg6[%c0_17, %c0_18, %c0_19] : memref<1x1x96xf32, #tpu.memory_space<vmem>>, vector<1x1x96xf32>
    %36 = vector.shape_cast %35 : vector<1x1x96xf32> to vector<1x96xf32>
    %37 = vector.broadcast %36 : vector<1x96xf32> to vector<24x96xf32>
    %38 = arith.addf %34, %37 : vector<24x96xf32>
    %39 = vector.extract_strided_slice %38 {offsets = [0, 0], sizes = [24, 32], strides = [1, 1]} : vector<24x96xf32> to vector<24x32xf32>
    %40 = vector.extract_strided_slice %38 {offsets = [0, 32], sizes = [24, 32], strides = [1, 1]} : vector<24x96xf32> to vector<24x32xf32>
    %41 = vector.extract_strided_slice %38 {offsets = [0, 64], sizes = [24, 32], strides = [1, 1]} : vector<24x96xf32> to vector<24x32xf32>
    %42 = tpu.iota {dimensions = array<i32: 1>} : vector<24x24xi32>
    %c17_i32 = arith.constant 17 : i32
    %43 = vector.broadcast %c17_i32 : i32 to vector<24x24xi32>
    %44 = arith.cmpi slt, %42, %43 : vector<24x24xi32>
    %45 = vector.extract_strided_slice %39 {offsets = [0, 0], sizes = [24, 8], strides = [1, 1]} : vector<24x32xf32> to vector<24x8xf32>
    %46 = arith.truncf %45 : vector<24x8xf32> to vector<24x8xbf16>
    %47 = vector.extract_strided_slice %40 {offsets = [0, 0], sizes = [24, 8], strides = [1, 1]} : vector<24x32xf32> to vector<24x8xf32>
    %48 = arith.truncf %47 : vector<24x8xf32> to vector<24x8xbf16>
    %49 = vector.extract_strided_slice %41 {offsets = [0, 0], sizes = [24, 8], strides = [1, 1]} : vector<24x32xf32> to vector<24x8xf32>
    %50 = arith.truncf %49 : vector<24x8xf32> to vector<24x8xbf16>
    %51 = tpu.transpose %48, [1, 0] : vector<24x8xbf16> -> vector<8x24xbf16>
    %cst_20 = arith.constant dense<0.000000e+00> : vector<24x24xf32>
    %52 = tpu.matmul %46, %51, %cst_20 {dimension_numbers = #tpu.dot_dimension_numbers<[1], [0], [0], [1], [0, 0, 1, 1], [], []>} : vector<24x8xbf16>, vector<8x24xbf16>, vector<24x24xf32> -> vector<24x24xf32>
    %cst_21 = arith.constant 0.353553385 : f32
    %53 = vector.broadcast %cst_21 : f32 to vector<24x24xf32>
    %54 = arith.mulf %52, %53 : vector<24x24xf32>
    %cst_22 = arith.constant -1.000000e+30 : f32
    %55 = vector.broadcast %cst_22 : f32 to vector<24x24xf32>
    %56 = arith.select %44, %54, %55 : vector<24x24xi1>, vector<24x24xf32>
    %cst_23 = arith.constant dense<0xFF800000> : vector<24xf32>
    %57 = vector.multi_reduction <maximumf>, %56, %cst_23 [1] : vector<24x24xf32> to vector<24xf32>
    %58 = vector.shape_cast %57 : vector<24xf32> to vector<24x1xf32>
    %59 = vector.broadcast %58 : vector<24x1xf32> to vector<24x24xf32>
    %60 = arith.subf %56, %59 : vector<24x24xf32>
    %61 = math.exp %60 : vector<24x24xf32>
    %cst_24 = arith.constant dense<0.000000e+00> : vector<24xf32>
    %62 = vector.multi_reduction <add>, %61, %cst_24 [1] : vector<24x24xf32> to vector<24xf32>
    %63 = vector.shape_cast %62 : vector<24xf32> to vector<24x1xf32>
    %64 = tpu.reciprocal %63 {approx = true} : vector<24x1xf32> -> vector<24x1xf32>
    %65 = vector.broadcast %64 : vector<24x1xf32> to vector<24x24xf32>
    %66 = arith.mulf %61, %65 : vector<24x24xf32>
    %67 = arith.truncf %66 : vector<24x24xf32> to vector<24x24xbf16>
    %cst_25 = arith.constant dense<0.000000e+00> : vector<24x8xf32>
    %68 = tpu.matmul %67, %50, %cst_25 {dimension_numbers = #tpu.dot_dimension_numbers<[1], [0], [0], [1], [0, 0, 1, 1], [], []>} : vector<24x24xbf16>, vector<24x8xbf16>, vector<24x8xf32> -> vector<24x8xf32>
    %69 = vector.extract_strided_slice %39 {offsets = [0, 8], sizes = [24, 8], strides = [1, 1]} : vector<24x32xf32> to vector<24x8xf32>
    %70 = arith.truncf %69 : vector<24x8xf32> to vector<24x8xbf16>
    %71 = vector.extract_strided_slice %40 {offsets = [0, 8], sizes = [24, 8], strides = [1, 1]} : vector<24x32xf32> to vector<24x8xf32>
    %72 = arith.truncf %71 : vector<24x8xf32> to vector<24x8xbf16>
    %73 = vector.extract_strided_slice %41 {offsets = [0, 8], sizes = [24, 8], strides = [1, 1]} : vector<24x32xf32> to vector<24x8xf32>
    %74 = arith.truncf %73 : vector<24x8xf32> to vector<24x8xbf16>
    %75 = tpu.transpose %72, [1, 0] : vector<24x8xbf16> -> vector<8x24xbf16>
    %cst_26 = arith.constant dense<0.000000e+00> : vector<24x24xf32>
    %76 = tpu.matmul %70, %75, %cst_26 {dimension_numbers = #tpu.dot_dimension_numbers<[1], [0], [0], [1], [0, 0, 1, 1], [], []>} : vector<24x8xbf16>, vector<8x24xbf16>, vector<24x24xf32> -> vector<24x24xf32>
    %cst_27 = arith.constant 0.353553385 : f32
    %77 = vector.broadcast %cst_27 : f32 to vector<24x24xf32>
    %78 = arith.mulf %76, %77 : vector<24x24xf32>
    %cst_28 = arith.constant -1.000000e+30 : f32
    %79 = vector.broadcast %cst_28 : f32 to vector<24x24xf32>
    %80 = arith.select %44, %78, %79 : vector<24x24xi1>, vector<24x24xf32>
    %cst_29 = arith.constant dense<0xFF800000> : vector<24xf32>
    %81 = vector.multi_reduction <maximumf>, %80, %cst_29 [1] : vector<24x24xf32> to vector<24xf32>
    %82 = vector.shape_cast %81 : vector<24xf32> to vector<24x1xf32>
    %83 = vector.broadcast %82 : vector<24x1xf32> to vector<24x24xf32>
    %84 = arith.subf %80, %83 : vector<24x24xf32>
    %85 = math.exp %84 : vector<24x24xf32>
    %cst_30 = arith.constant dense<0.000000e+00> : vector<24xf32>
    %86 = vector.multi_reduction <add>, %85, %cst_30 [1] : vector<24x24xf32> to vector<24xf32>
    %87 = vector.shape_cast %86 : vector<24xf32> to vector<24x1xf32>
    %88 = tpu.reciprocal %87 {approx = true} : vector<24x1xf32> -> vector<24x1xf32>
    %89 = vector.broadcast %88 : vector<24x1xf32> to vector<24x24xf32>
    %90 = arith.mulf %85, %89 : vector<24x24xf32>
    %91 = arith.truncf %90 : vector<24x24xf32> to vector<24x24xbf16>
    %cst_31 = arith.constant dense<0.000000e+00> : vector<24x8xf32>
    %92 = tpu.matmul %91, %74, %cst_31 {dimension_numbers = #tpu.dot_dimension_numbers<[1], [0], [0], [1], [0, 0, 1, 1], [], []>} : vector<24x24xbf16>, vector<24x8xbf16>, vector<24x8xf32> -> vector<24x8xf32>
    %93 = vector.extract_strided_slice %39 {offsets = [0, 16], sizes = [24, 8], strides = [1, 1]} : vector<24x32xf32> to vector<24x8xf32>
    %94 = arith.truncf %93 : vector<24x8xf32> to vector<24x8xbf16>
    %95 = vector.extract_strided_slice %40 {offsets = [0, 16], sizes = [24, 8], strides = [1, 1]} : vector<24x32xf32> to vector<24x8xf32>
    %96 = arith.truncf %95 : vector<24x8xf32> to vector<24x8xbf16>
    %97 = vector.extract_strided_slice %41 {offsets = [0, 16], sizes = [24, 8], strides = [1, 1]} : vector<24x32xf32> to vector<24x8xf32>
    %98 = arith.truncf %97 : vector<24x8xf32> to vector<24x8xbf16>
    %99 = tpu.transpose %96, [1, 0] : vector<24x8xbf16> -> vector<8x24xbf16>
    %cst_32 = arith.constant dense<0.000000e+00> : vector<24x24xf32>
    %100 = tpu.matmul %94, %99, %cst_32 {dimension_numbers = #tpu.dot_dimension_numbers<[1], [0], [0], [1], [0, 0, 1, 1], [], []>} : vector<24x8xbf16>, vector<8x24xbf16>, vector<24x24xf32> -> vector<24x24xf32>
    %cst_33 = arith.constant 0.353553385 : f32
    %101 = vector.broadcast %cst_33 : f32 to vector<24x24xf32>
    %102 = arith.mulf %100, %101 : vector<24x24xf32>
    %cst_34 = arith.constant -1.000000e+30 : f32
    %103 = vector.broadcast %cst_34 : f32 to vector<24x24xf32>
    %104 = arith.select %44, %102, %103 : vector<24x24xi1>, vector<24x24xf32>
    %cst_35 = arith.constant dense<0xFF800000> : vector<24xf32>
    %105 = vector.multi_reduction <maximumf>, %104, %cst_35 [1] : vector<24x24xf32> to vector<24xf32>
    %106 = vector.shape_cast %105 : vector<24xf32> to vector<24x1xf32>
    %107 = vector.broadcast %106 : vector<24x1xf32> to vector<24x24xf32>
    %108 = arith.subf %104, %107 : vector<24x24xf32>
    %109 = math.exp %108 : vector<24x24xf32>
    %cst_36 = arith.constant dense<0.000000e+00> : vector<24xf32>
    %110 = vector.multi_reduction <add>, %109, %cst_36 [1] : vector<24x24xf32> to vector<24xf32>
    %111 = vector.shape_cast %110 : vector<24xf32> to vector<24x1xf32>
    %112 = tpu.reciprocal %111 {approx = true} : vector<24x1xf32> -> vector<24x1xf32>
    %113 = vector.broadcast %112 : vector<24x1xf32> to vector<24x24xf32>
    %114 = arith.mulf %109, %113 : vector<24x24xf32>
    %115 = arith.truncf %114 : vector<24x24xf32> to vector<24x24xbf16>
    %cst_37 = arith.constant dense<0.000000e+00> : vector<24x8xf32>
    %116 = tpu.matmul %115, %98, %cst_37 {dimension_numbers = #tpu.dot_dimension_numbers<[1], [0], [0], [1], [0, 0, 1, 1], [], []>} : vector<24x24xbf16>, vector<24x8xbf16>, vector<24x8xf32> -> vector<24x8xf32>
    %117 = vector.extract_strided_slice %39 {offsets = [0, 24], sizes = [24, 8], strides = [1, 1]} : vector<24x32xf32> to vector<24x8xf32>
    %118 = arith.truncf %117 : vector<24x8xf32> to vector<24x8xbf16>
    %119 = vector.extract_strided_slice %40 {offsets = [0, 24], sizes = [24, 8], strides = [1, 1]} : vector<24x32xf32> to vector<24x8xf32>
    %120 = arith.truncf %119 : vector<24x8xf32> to vector<24x8xbf16>
    %121 = vector.extract_strided_slice %41 {offsets = [0, 24], sizes = [24, 8], strides = [1, 1]} : vector<24x32xf32> to vector<24x8xf32>
    %122 = arith.truncf %121 : vector<24x8xf32> to vector<24x8xbf16>
    %123 = tpu.transpose %120, [1, 0] : vector<24x8xbf16> -> vector<8x24xbf16>
    %cst_38 = arith.constant dense<0.000000e+00> : vector<24x24xf32>
    %124 = tpu.matmul %118, %123, %cst_38 {dimension_numbers = #tpu.dot_dimension_numbers<[1], [0], [0], [1], [0, 0, 1, 1], [], []>} : vector<24x8xbf16>, vector<8x24xbf16>, vector<24x24xf32> -> vector<24x24xf32>
    %cst_39 = arith.constant 0.353553385 : f32
    %125 = vector.broadcast %cst_39 : f32 to vector<24x24xf32>
    %126 = arith.mulf %124, %125 : vector<24x24xf32>
    %cst_40 = arith.constant -1.000000e+30 : f32
    %127 = vector.broadcast %cst_40 : f32 to vector<24x24xf32>
    %128 = arith.select %44, %126, %127 : vector<24x24xi1>, vector<24x24xf32>
    %cst_41 = arith.constant dense<0xFF800000> : vector<24xf32>
    %129 = vector.multi_reduction <maximumf>, %128, %cst_41 [1] : vector<24x24xf32> to vector<24xf32>
    %130 = vector.shape_cast %129 : vector<24xf32> to vector<24x1xf32>
    %131 = vector.broadcast %130 : vector<24x1xf32> to vector<24x24xf32>
    %132 = arith.subf %128, %131 : vector<24x24xf32>
    %133 = math.exp %132 : vector<24x24xf32>
    %cst_42 = arith.constant dense<0.000000e+00> : vector<24xf32>
    %134 = vector.multi_reduction <add>, %133, %cst_42 [1] : vector<24x24xf32> to vector<24xf32>
    %135 = vector.shape_cast %134 : vector<24xf32> to vector<24x1xf32>
    %136 = tpu.reciprocal %135 {approx = true} : vector<24x1xf32> -> vector<24x1xf32>
    %137 = vector.broadcast %136 : vector<24x1xf32> to vector<24x24xf32>
    %138 = arith.mulf %133, %137 : vector<24x24xf32>
    %139 = arith.truncf %138 : vector<24x24xf32> to vector<24x24xbf16>
    %cst_43 = arith.constant dense<0.000000e+00> : vector<24x8xf32>
    %140 = tpu.matmul %139, %122, %cst_43 {dimension_numbers = #tpu.dot_dimension_numbers<[1], [0], [0], [1], [0, 0, 1, 1], [], []>} : vector<24x24xbf16>, vector<24x8xbf16>, vector<24x8xf32> -> vector<24x8xf32>
    %141 = tpu.concatenate %68, %92, %116, %140 in 1 : vector<24x8xf32>, vector<24x8xf32>, vector<24x8xf32>, vector<24x8xf32> -> vector<24x32xf32>
    %142 = arith.truncf %141 : vector<24x32xf32> to vector<24x32xbf16>
    %c0_44 = arith.constant 0 : index
    %c0_45 = arith.constant 0 : index
    %c0_46 = arith.constant 0 : index
    %143 = vector.load %arg7[%c0_44, %c0_45, %c0_46] : memref<1x32x32xbf16, #tpu.memory_space<vmem>>, vector<1x32x32xbf16>
    %144 = vector.shape_cast %143 : vector<1x32x32xbf16> to vector<32x32xbf16>
    %cst_47 = arith.constant dense<0.000000e+00> : vector<24x32xf32>
    %145 = tpu.matmul %142, %144, %cst_47 {dimension_numbers = #tpu.dot_dimension_numbers<[1], [0], [0], [1], [0, 0, 1, 1], [], []>} : vector<24x32xbf16>, vector<32x32xbf16>, vector<24x32xf32> -> vector<24x32xf32>
    %c0_48 = arith.constant 0 : index
    %c0_49 = arith.constant 0 : index
    %c0_50 = arith.constant 0 : index
    %146 = vector.load %arg8[%c0_48, %c0_49, %c0_50] : memref<1x1x32xf32, #tpu.memory_space<vmem>>, vector<1x1x32xf32>
    %147 = vector.shape_cast %146 : vector<1x1x32xf32> to vector<1x32xf32>
    %148 = vector.broadcast %147 : vector<1x32xf32> to vector<24x32xf32>
    %149 = arith.addf %145, %148 : vector<24x32xf32>
    %150 = arith.addf %4, %149 : vector<24x32xf32>
    %cst_51 = arith.constant dense<0.000000e+00> : vector<24xf32>
    %151 = vector.multi_reduction <add>, %150, %cst_51 [1] : vector<24x32xf32> to vector<24xf32>
    %152 = vector.shape_cast %151 : vector<24xf32> to vector<24x1xf32>
    %cst_52 = arith.constant 3.200000e+01 : f32
    %153 = vector.broadcast %cst_52 : f32 to vector<24x1xf32>
    %154 = arith.divf %152, %153 : vector<24x1xf32>
    %155 = vector.broadcast %154 : vector<24x1xf32> to vector<24x32xf32>
    %156 = arith.subf %150, %155 : vector<24x32xf32>
    %157 = arith.mulf %156, %156 : vector<24x32xf32>
    %cst_53 = arith.constant dense<0.000000e+00> : vector<24xf32>
    %158 = vector.multi_reduction <add>, %157, %cst_53 [1] : vector<24x32xf32> to vector<24xf32>
    %159 = vector.shape_cast %158 : vector<24xf32> to vector<24x1xf32>
    %cst_54 = arith.constant 3.200000e+01 : f32
    %160 = vector.broadcast %cst_54 : f32 to vector<24x1xf32>
    %161 = arith.divf %159, %160 : vector<24x1xf32>
    %162 = vector.broadcast %154 : vector<24x1xf32> to vector<24x32xf32>
    %163 = arith.subf %150, %162 : vector<24x32xf32>
    %cst_55 = arith.constant 9.99999974E-6 : f32
    %164 = vector.broadcast %cst_55 : f32 to vector<24x1xf32>
    %165 = arith.addf %161, %164 : vector<24x1xf32>
    %166 = math.rsqrt %165 : vector<24x1xf32>
    %167 = vector.broadcast %166 : vector<24x1xf32> to vector<24x32xf32>
    %168 = arith.mulf %163, %167 : vector<24x32xf32>
    %c0_56 = arith.constant 0 : index
    %c0_57 = arith.constant 0 : index
    %c0_58 = arith.constant 0 : index
    %169 = vector.load %arg9[%c0_56, %c0_57, %c0_58] : memref<1x1x32xf32, #tpu.memory_space<vmem>>, vector<1x1x32xf32>
    %170 = vector.shape_cast %169 : vector<1x1x32xf32> to vector<1x32xf32>
    %171 = vector.broadcast %170 : vector<1x32xf32> to vector<24x32xf32>
    %172 = arith.mulf %168, %171 : vector<24x32xf32>
    %c0_59 = arith.constant 0 : index
    %c0_60 = arith.constant 0 : index
    %c0_61 = arith.constant 0 : index
    %173 = vector.load %arg10[%c0_59, %c0_60, %c0_61] : memref<1x1x32xf32, #tpu.memory_space<vmem>>, vector<1x1x32xf32>
    %174 = vector.shape_cast %173 : vector<1x1x32xf32> to vector<1x32xf32>
    %175 = vector.broadcast %174 : vector<1x32xf32> to vector<24x32xf32>
    %176 = arith.addf %172, %175 : vector<24x32xf32>
    %177 = arith.truncf %176 : vector<24x32xf32> to vector<24x32xbf16>
    %c0_62 = arith.constant 0 : index
    %c0_63 = arith.constant 0 : index
    %c0_64 = arith.constant 0 : index
    %178 = vector.load %arg11[%c0_62, %c0_63, %c0_64] : memref<1x32x128xbf16, #tpu.memory_space<vmem>>, vector<1x32x128xbf16>
    %179 = vector.shape_cast %178 : vector<1x32x128xbf16> to vector<32x128xbf16>
    %cst_65 = arith.constant dense<0.000000e+00> : vector<24x128xf32>
    %180 = tpu.matmul %177, %179, %cst_65 {dimension_numbers = #tpu.dot_dimension_numbers<[1], [0], [0], [1], [0, 0, 1, 1], [], []>} : vector<24x32xbf16>, vector<32x128xbf16>, vector<24x128xf32> -> vector<24x128xf32>
    %c0_66 = arith.constant 0 : index
    %c0_67 = arith.constant 0 : index
    %c0_68 = arith.constant 0 : index
    %181 = vector.load %arg12[%c0_66, %c0_67, %c0_68] : memref<1x1x128xf32, #tpu.memory_space<vmem>>, vector<1x1x128xf32>
    %182 = vector.shape_cast %181 : vector<1x1x128xf32> to vector<1x128xf32>
    %183 = vector.broadcast %182 : vector<1x128xf32> to vector<24x128xf32>
    %184 = arith.addf %180, %183 : vector<24x128xf32>
    %185 = arith.mulf %184, %184 : vector<24x128xf32>
    %186 = arith.mulf %184, %185 : vector<24x128xf32>
    %cst_69 = arith.constant 4.471500e-02 : f32
    %187 = vector.broadcast %cst_69 : f32 to vector<24x128xf32>
    %188 = arith.mulf %187, %186 : vector<24x128xf32>
    %189 = arith.addf %184, %188 : vector<24x128xf32>
    %cst_70 = arith.constant 0.797884583 : f32
    %190 = vector.broadcast %cst_70 : f32 to vector<24x128xf32>
    %191 = arith.mulf %190, %189 : vector<24x128xf32>
    %192 = math.tanh %191 : vector<24x128xf32>
    %cst_71 = arith.constant 1.000000e+00 : f32
    %193 = vector.broadcast %cst_71 : f32 to vector<24x128xf32>
    %194 = arith.addf %193, %192 : vector<24x128xf32>
    %cst_72 = arith.constant 5.000000e-01 : f32
    %195 = vector.broadcast %cst_72 : f32 to vector<24x128xf32>
    %196 = arith.mulf %195, %194 : vector<24x128xf32>
    %197 = arith.mulf %184, %196 : vector<24x128xf32>
    %198 = arith.truncf %197 : vector<24x128xf32> to vector<24x128xbf16>
    %c0_73 = arith.constant 0 : index
    %c0_74 = arith.constant 0 : index
    %c0_75 = arith.constant 0 : index
    %199 = vector.load %arg13[%c0_73, %c0_74, %c0_75] : memref<1x128x32xbf16, #tpu.memory_space<vmem>>, vector<1x128x32xbf16>
    %200 = vector.shape_cast %199 : vector<1x128x32xbf16> to vector<128x32xbf16>
    %cst_76 = arith.constant dense<0.000000e+00> : vector<24x32xf32>
    %201 = tpu.matmul %198, %200, %cst_76 {dimension_numbers = #tpu.dot_dimension_numbers<[1], [0], [0], [1], [0, 0, 1, 1], [], []>} : vector<24x128xbf16>, vector<128x32xbf16>, vector<24x32xf32> -> vector<24x32xf32>
    %c0_77 = arith.constant 0 : index
    %c0_78 = arith.constant 0 : index
    %c0_79 = arith.constant 0 : index
    %202 = vector.load %arg14[%c0_77, %c0_78, %c0_79] : memref<1x1x32xf32, #tpu.memory_space<vmem>>, vector<1x1x32xf32>
    %203 = vector.shape_cast %202 : vector<1x1x32xf32> to vector<1x32xf32>
    %204 = vector.broadcast %203 : vector<1x32xf32> to vector<24x32xf32>
    %205 = arith.addf %201, %204 : vector<24x32xf32>
    %206 = arith.addf %150, %205 : vector<24x32xf32>
    %c0_80 = arith.constant 0 : index
    %c0_81 = arith.constant 0 : index
    %c0_82 = arith.constant 0 : index
    %207 = vector.load %arg15[%c0_80, %c0_81, %c0_82] : memref<1x24x32xf32, #tpu.memory_space<vmem>>, vector<1x24x32xf32>
    %208 = vector.shape_cast %207 : vector<1x24x32xf32> to vector<24x32xf32>
    %209 = vector.shape_cast %206 : vector<24x32xf32> to vector<1x24x32xf32>
    tpu.vector_store %arg15[%c0_80, %c0_81, %c0_82], %209 {strides = array<i32>} : memref<1x24x32xf32, #tpu.memory_space<vmem>>, vector<1x24x32xf32>,
    return
  }
  func.func @transform_0(%arg0: i32, %arg1: i32) -> (i32, i32, i32) {
    %c0_i32 = arith.constant 0 : i32
    %c0_i32_0 = arith.constant 0 : i32
    %c0_i32_1 = arith.constant 0 : i32
    return %arg0, %c0_i32, %c0_i32_0 : i32, i32, i32
  }
  func.func @transform_1(%arg0: i32, %arg1: i32) -> (i32, i32, i32) {
    %c0_i32 = arith.constant 0 : i32
    %c0_i32_0 = arith.constant 0 : i32
    %c0_i32_1 = arith.constant 0 : i32
    return %arg1, %c0_i32, %c0_i32_0 : i32, i32, i32
  }
  func.func @transform_2(%arg0: i32, %arg1: i32) -> (i32, i32, i32) {
    %c0_i32 = arith.constant 0 : i32
    %c0_i32_0 = arith.constant 0 : i32
    %c0_i32_1 = arith.constant 0 : i32
    return %arg1, %c0_i32, %c0_i32_0 : i32, i32, i32
  }
  func.func @transform_3(%arg0: i32, %arg1: i32) -> (i32, i32, i32) {
    %c0_i32 = arith.constant 0 : i32
    %c0_i32_0 = arith.constant 0 : i32
    %c0_i32_1 = arith.constant 0 : i32
    return %arg1, %c0_i32, %c0_i32_0 : i32, i32, i32
  }
  func.func @transform_4(%arg0: i32, %arg1: i32) -> (i32, i32, i32) {
    %c0_i32 = arith.constant 0 : i32
    %c0_i32_0 = arith.constant 0 : i32
    %c0_i32_1 = arith.constant 0 : i32
    return %arg1, %c0_i32, %c0_i32_0 : i32, i32, i32
  }
  func.func @transform_5(%arg0: i32, %arg1: i32) -> (i32, i32, i32) {
    %c0_i32 = arith.constant 0 : i32
    %c0_i32_0 = arith.constant 0 : i32
    %c0_i32_1 = arith.constant 0 : i32
    return %arg1, %c0_i32, %c0_i32_0 : i32, i32, i32
  }
  func.func @transform_6(%arg0: i32, %arg1: i32) -> (i32, i32, i32) {
    %c0_i32 = arith.constant 0 : i32
    %c0_i32_0 = arith.constant 0 : i32
    %c0_i32_1 = arith.constant 0 : i32
    return %arg1, %c0_i32, %c0_i32_0 : i32, i32, i32
  }
  func.func @transform_7(%arg0: i32, %arg1: i32) -> (i32, i32, i32) {
    %c0_i32 = arith.constant 0 : i32
    %c0_i32_0 = arith.constant 0 : i32
    %c0_i32_1 = arith.constant 0 : i32
    return %arg1, %c0_i32, %c0_i32_0 : i32, i32, i32
  }
  func.func @transform_8(%arg0: i32, %arg1: i32) -> (i32, i32, i32) {
    %c0_i32 = arith.constant 0 : i32
    %c0_i32_0 = arith.constant 0 : i32
    %c0_i32_1 = arith.constant 0 : i32
    return %arg1, %c0_i32, %c0_i32_0 : i32, i32, i32
  }
  func.func @transform_9(%arg0: i32, %arg1: i32) -> (i32, i32, i32) {
    %c0_i32 = arith.constant 0 : i32
    %c0_i32_0 = arith.constant 0 : i32
    %c0_i32_1 = arith.constant 0 : i32
    return %arg1, %c0_i32, %c0_i32_0 : i32, i32, i32
  }
  func.func @transform_10(%arg0: i32, %arg1: i32) -> (i32, i32, i32) {
    %c0_i32 = arith.constant 0 : i32
    %c0_i32_0 = arith.constant 0 : i32
    %c0_i32_1 = arith.constant 0 : i32
    return %arg1, %c0_i32, %c0_i32_0 : i32, i32, i32
  }
  func.func @transform_11(%arg0: i32, %arg1: i32) -> (i32, i32, i32) {
    %c0_i32 = arith.constant 0 : i32
    %c0_i32_0 = arith.constant 0 : i32
    %c0_i32_1 = arith.constant 0 : i32
    return %arg1, %c0_i32, %c0_i32_0 : i32, i32, i32
  }
  func.func @transform_12(%arg0: i32, %arg1: i32) -> (i32, i32, i32) {
    %c0_i32 = arith.constant 0 : i32
    %c0_i32_0 = arith.constant 0 : i32
    %c0_i32_1 = arith.constant 0 : i32
    return %arg1, %c0_i32, %c0_i32_0 : i32, i32, i32
  }
  func.func @transform_13(%arg0: i32, %arg1: i32) -> (i32, i32, i32) {
    %c0_i32 = arith.constant 0 : i32
    %c0_i32_0 = arith.constant 0 : i32
    %c0_i32_1 = arith.constant 0 : i32
    return %arg0, %c0_i32, %c0_i32_0 : i32, i32, i32
  }
}

module attributes {stable_mosaic.version = 11 : i64} {
  func.func @patch_embed_kernel(%arg0: i32, %arg1: memref<32x48xbf16, #tpu.memory_space<vmem>>, %arg2: memref<48x32xbf16, #tpu.memory_space<vmem>>, %arg3: memref<1x32xf32, #tpu.memory_space<vmem>>, %arg4: memref<32x32xf32, #tpu.memory_space<vmem>>) attributes {dimension_semantics = [#tpu.dimension_semantics<parallel>], iteration_bounds = array<i64: 1>, scalar_prefetch = 0 : i64, scratch_operands = 0 : i64, tpu.core_type = #tpu.core_type<tc>, window_params = [{transform_indices = @transform_0, window_bounds = array<i64: 32, 48>}, {pipeline_mode = #tpu.pipeline_mode<synchronous>, transform_indices = @transform_1, window_bounds = array<i64: 48, 32>}, {pipeline_mode = #tpu.pipeline_mode<synchronous>, transform_indices = @transform_2, window_bounds = array<i64: 1, 32>}, {transform_indices = @transform_3, window_bounds = array<i64: 32, 32>}]} {
    %c0 = arith.constant 0 : index
    %c0_0 = arith.constant 0 : index
    %0 = vector.load %arg1[%c0, %c0_0] : memref<32x48xbf16, #tpu.memory_space<vmem>>, vector<32x48xbf16>
    %c0_1 = arith.constant 0 : index
    %c0_2 = arith.constant 0 : index
    %1 = vector.load %arg2[%c0_1, %c0_2] : memref<48x32xbf16, #tpu.memory_space<vmem>>, vector<48x32xbf16>
    %cst = arith.constant dense<0.000000e+00> : vector<32x32xf32>
    %2 = tpu.matmul %0, %1, %cst {dimension_numbers = #tpu.dot_dimension_numbers<[1], [0], [0], [1], [0, 0, 1, 1], [], []>} : vector<32x48xbf16>, vector<48x32xbf16>, vector<32x32xf32> -> vector<32x32xf32>
    %c0_3 = arith.constant 0 : index
    %c0_4 = arith.constant 0 : index
    %3 = vector.load %arg3[%c0_3, %c0_4] : memref<1x32xf32, #tpu.memory_space<vmem>>, vector<1x32xf32>
    %4 = vector.broadcast %3 : vector<1x32xf32> to vector<32x32xf32>
    %5 = arith.addf %2, %4 : vector<32x32xf32>
    %c0_5 = arith.constant 0 : index
    %c0_6 = arith.constant 0 : index
    %6 = vector.load %arg4[%c0_5, %c0_6] : memref<32x32xf32, #tpu.memory_space<vmem>>, vector<32x32xf32>
    tpu.vector_store %arg4[%c0_5, %c0_6], %5 {strides = array<i32>} : memref<32x32xf32, #tpu.memory_space<vmem>>, vector<32x32xf32>,
    return
  }
  func.func @transform_0(%arg0: i32) -> (i32, i32) {
    %c0_i32 = arith.constant 0 : i32
    %c0_i32_0 = arith.constant 0 : i32
    return %arg0, %c0_i32 : i32, i32
  }
  func.func @transform_1(%arg0: i32) -> (i32, i32) {
    %c0_i32 = arith.constant 0 : i32
    %c0_i32_0 = arith.constant 0 : i32
    %c0_i32_1 = arith.constant 0 : i32
    return %c0_i32, %c0_i32_0 : i32, i32
  }
  func.func @transform_2(%arg0: i32) -> (i32, i32) {
    %c0_i32 = arith.constant 0 : i32
    %c0_i32_0 = arith.constant 0 : i32
    %c0_i32_1 = arith.constant 0 : i32
    return %c0_i32, %c0_i32_0 : i32, i32
  }
  func.func @transform_3(%arg0: i32) -> (i32, i32) {
    %c0_i32 = arith.constant 0 : i32
    %c0_i32_0 = arith.constant 0 : i32
    return %arg0, %c0_i32 : i32, i32
  }
}

module attributes {stable_mosaic.version = 11 : i64} {
  func.func @head_kernel(%arg0: i32, %arg1: memref<2x32xf32, #tpu.memory_space<vmem>>, %arg2: memref<1x32xf32, #tpu.memory_space<vmem>>, %arg3: memref<1x32xf32, #tpu.memory_space<vmem>>, %arg4: memref<32x128xbf16, #tpu.memory_space<vmem>>, %arg5: memref<1x128xf32, #tpu.memory_space<vmem>>, %arg6: memref<2x128xf32, #tpu.memory_space<vmem>>) attributes {dimension_semantics = [#tpu.dimension_semantics<arbitrary>], iteration_bounds = array<i64: 1>, scalar_prefetch = 0 : i64, scratch_operands = 0 : i64, tpu.core_type = #tpu.core_type<tc>, window_params = [{pipeline_mode = #tpu.pipeline_mode<synchronous>, transform_indices = @transform_0, window_bounds = array<i64: 2, 32>}, {pipeline_mode = #tpu.pipeline_mode<synchronous>, transform_indices = @transform_1, window_bounds = array<i64: 1, 32>}, {pipeline_mode = #tpu.pipeline_mode<synchronous>, transform_indices = @transform_2, window_bounds = array<i64: 1, 32>}, {pipeline_mode = #tpu.pipeline_mode<synchronous>, transform_indices = @transform_3, window_bounds = array<i64: 32, 128>}, {pipeline_mode = #tpu.pipeline_mode<synchronous>, transform_indices = @transform_4, window_bounds = array<i64: 1, 128>}, {pipeline_mode = #tpu.pipeline_mode<synchronous>, transform_indices = @transform_5, window_bounds = array<i64: 2, 128>}]} {
    %c0 = arith.constant 0 : index
    %c0_0 = arith.constant 0 : index
    %0 = vector.load %arg1[%c0, %c0_0] : memref<2x32xf32, #tpu.memory_space<vmem>>, vector<2x32xf32>
    %cst = arith.constant dense<0.000000e+00> : vector<2xf32>
    %1 = vector.multi_reduction <add>, %0, %cst [1] : vector<2x32xf32> to vector<2xf32>
    %2 = vector.shape_cast %1 : vector<2xf32> to vector<2x1xf32>
    %cst_1 = arith.constant 3.200000e+01 : f32
    %3 = vector.broadcast %cst_1 : f32 to vector<2x1xf32>
    %4 = arith.divf %2, %3 : vector<2x1xf32>
    %5 = vector.broadcast %4 : vector<2x1xf32> to vector<2x32xf32>
    %6 = arith.subf %0, %5 : vector<2x32xf32>
    %7 = arith.mulf %6, %6 : vector<2x32xf32>
    %cst_2 = arith.constant dense<0.000000e+00> : vector<2xf32>
    %8 = vector.multi_reduction <add>, %7, %cst_2 [1] : vector<2x32xf32> to vector<2xf32>
    %9 = vector.shape_cast %8 : vector<2xf32> to vector<2x1xf32>
    %cst_3 = arith.constant 3.200000e+01 : f32
    %10 = vector.broadcast %cst_3 : f32 to vector<2x1xf32>
    %11 = arith.divf %9, %10 : vector<2x1xf32>
    %12 = vector.broadcast %4 : vector<2x1xf32> to vector<2x32xf32>
    %13 = arith.subf %0, %12 : vector<2x32xf32>
    %cst_4 = arith.constant 9.99999974E-6 : f32
    %14 = vector.broadcast %cst_4 : f32 to vector<2x1xf32>
    %15 = arith.addf %11, %14 : vector<2x1xf32>
    %16 = math.rsqrt %15 : vector<2x1xf32>
    %17 = vector.broadcast %16 : vector<2x1xf32> to vector<2x32xf32>
    %18 = arith.mulf %13, %17 : vector<2x32xf32>
    %c0_5 = arith.constant 0 : index
    %c0_6 = arith.constant 0 : index
    %19 = vector.load %arg2[%c0_5, %c0_6] : memref<1x32xf32, #tpu.memory_space<vmem>>, vector<1x32xf32>
    %20 = vector.broadcast %19 : vector<1x32xf32> to vector<2x32xf32>
    %21 = arith.mulf %18, %20 : vector<2x32xf32>
    %c0_7 = arith.constant 0 : index
    %c0_8 = arith.constant 0 : index
    %22 = vector.load %arg3[%c0_7, %c0_8] : memref<1x32xf32, #tpu.memory_space<vmem>>, vector<1x32xf32>
    %23 = vector.broadcast %22 : vector<1x32xf32> to vector<2x32xf32>
    %24 = arith.addf %21, %23 : vector<2x32xf32>
    %25 = arith.truncf %24 : vector<2x32xf32> to vector<2x32xbf16>
    %c0_9 = arith.constant 0 : index
    %c0_10 = arith.constant 0 : index
    %26 = vector.load %arg4[%c0_9, %c0_10] : memref<32x128xbf16, #tpu.memory_space<vmem>>, vector<32x128xbf16>
    %cst_11 = arith.constant dense<0.000000e+00> : vector<2x128xf32>
    %27 = tpu.matmul %25, %26, %cst_11 {dimension_numbers = #tpu.dot_dimension_numbers<[1], [0], [0], [1], [0, 0, 1, 1], [], []>} : vector<2x32xbf16>, vector<32x128xbf16>, vector<2x128xf32> -> vector<2x128xf32>
    %c0_12 = arith.constant 0 : index
    %c0_13 = arith.constant 0 : index
    %28 = vector.load %arg5[%c0_12, %c0_13] : memref<1x128xf32, #tpu.memory_space<vmem>>, vector<1x128xf32>
    %29 = vector.broadcast %28 : vector<1x128xf32> to vector<2x128xf32>
    %30 = arith.addf %27, %29 : vector<2x128xf32>
    %c0_14 = arith.constant 0 : index
    %c0_15 = arith.constant 0 : index
    %31 = vector.load %arg6[%c0_14, %c0_15] : memref<2x128xf32, #tpu.memory_space<vmem>>, vector<2x128xf32>
    tpu.vector_store %arg6[%c0_14, %c0_15], %30 {strides = array<i32>} : memref<2x128xf32, #tpu.memory_space<vmem>>, vector<2x128xf32>,
    return
  }
  func.func @transform_0(%arg0: i32) -> (i32, i32) {
    %c0_i32 = arith.constant 0 : i32
    %c0_i32_0 = arith.constant 0 : i32
    %c0_i32_1 = arith.constant 0 : i32
    return %c0_i32, %c0_i32_0 : i32, i32
  }
  func.func @transform_1(%arg0: i32) -> (i32, i32) {
    %c0_i32 = arith.constant 0 : i32
    %c0_i32_0 = arith.constant 0 : i32
    %c0_i32_1 = arith.constant 0 : i32
    return %c0_i32, %c0_i32_0 : i32, i32
  }
  func.func @transform_2(%arg0: i32) -> (i32, i32) {
    %c0_i32 = arith.constant 0 : i32
    %c0_i32_0 = arith.constant 0 : i32
    %c0_i32_1 = arith.constant 0 : i32
    return %c0_i32, %c0_i32_0 : i32, i32
  }
  func.func @transform_3(%arg0: i32) -> (i32, i32) {
    %c0_i32 = arith.constant 0 : i32
    %c0_i32_0 = arith.constant 0 : i32
    %c0_i32_1 = arith.constant 0 : i32
    return %c0_i32, %c0_i32_0 : i32, i32
  }
  func.func @transform_4(%arg0: i32) -> (i32, i32) {
    %c0_i32 = arith.constant 0 : i32
    %c0_i32_0 = arith.constant 0 : i32
    %c0_i32_1 = arith.constant 0 : i32
    return %c0_i32, %c0_i32_0 : i32, i32
  }
  func.func @transform_5(%arg0: i32) -> (i32, i32) {
    %c0_i32 = arith.constant 0 : i32
    %c0_i32_0 = arith.constant 0 : i32
    %c0_i32_1 = arith.constant 0 : i32
    return %c0_i32, %c0_i32_0 : i32, i32
  }
}

</mosaic_0001>

<bundles_post_ra>
// kernel: vit_forward.3
= control target key start
LH: loop header
LB: loop body
LE: loop exit
PB: predicated region body
PF: predicated region fallthrough
CT: control target
= control target key end

     0   :  { %vm60_vm0 = vcmask 392192   ;;  %vm116_vm1 = vcmask 261120   ;;  %s203_s1 = inlined_call_operand.vmem [shape: bf16[48,32], index: 1, kind: input, shape index: {}]   ;;  %s204_s0 = inlined_call_operand.vmem [shape: bf16[32,48], index: 0, kind: input, shape index: {}]   ;;  %s205_s2 = inlined_call_operand.vmem [shape: f32[1,32], index: 2, kind: input, shape index: {}]   ;;  %s206_s3 = inlined_call_operand.vmem [shape: f32[32,32], index: 3, kind: output, shape index: {}]  }
   0x1   :  { %v148_v0 = vld [vmem:[%s203_s1] sm:$0xff]   ;;  %v149_v1 = vld [vmem:[%s203_s1 + $0x8] sm:$0xff]   ;;  %v150_v3 = vld [vmem:[%s203_s1 + $0x10] sm:$0xff]  }
   0x2   :  { %138 = vmatprep.subr.bf16.mxu0 %v148_v0  ;;  %v151_v2 = vld [vmem:[%s204_s0] sm:$0xff]   ;;  %v152_v4 = vld [vmem:[%s204_s0 + $0x8] sm:$0xff]  }
   0x3   :  { %139 = vmatpush3.bf16.msra.mxu0 %v148_v0  ;;  %144 = vmatprep.mubr.msk.bf16.mxu0 %vm60_vm0, %v151_v2  ;;  %v125_v5 = vld [vmem:[%s205_s2] ss:$0 sm:$0xff] }
   0x4   :  { %140 = vmatprep.subr.bf16.mxu0 %v149_v1 }
   0x7   :  { %141 = vmatpush3.bf16.msra.mxu0 %v149_v1 }
   0x8   :  { %142 = vmatprep.subr.bf16.mxu0 %v150_v3 }
   0xb   :  { %143 = vmatpush3.bf16.msra.mxu0 %v150_v3 }
   0xe   :  { %145 = vmatmul.mubr.msk.bf16.vlgmr.msra.gmra.mrb[0].mxu0 %vm60_vm0, %v152_v4 }
  0xe1   :  { %v146_v6 = vpop.f32.mrb[0].mxu0 }
  0xe2   :  { %v110_v7 = vadd.f32 %v146_v6, %v125_v5  ;;  %v101_v8 = vpop.f32.mrb[1].mxu0 }
  0xe3   :  { %v102_v9 = vadd.f32 %v125_v5, %v101_v8  ;;  %v147_v10 = vpop.f32.mrb[2].mxu0 }
  0xe4   :  { %119 = vst.msk [vmem:[%s206_s3 + $0x10] sm:$0xff] %vm116_vm1, %v110_v7  ;;  %v113_v11 = vadd.f32 %v147_v10, %v125_v5  ;;  %v104_v12 = vpop.f32.mrb[3].mxu0 }
  0xe5   :  { %117 = vst.msk [vmem:[%s206_s3] sm:$0xff] %vm116_vm1, %v102_v9  ;;  %v105_v13 = vadd.f32 %v125_v5, %v104_v12 }
  0xe6   :  { %120 = vst.msk [vmem:[%s206_s3 + $0x18] sm:$0xff] %vm116_vm1, %v113_v11 }
  0xe7   :  { %118 = vst.msk [vmem:[%s206_s3 + $0x8] sm:$0xff] %vm116_vm1, %v105_v13 }

// kernel: vit_forward.5
= control target key start
LH: loop header
LB: loop body
LE: loop exit
PB: predicated region body
PF: predicated region fallthrough
CT: control target
= control target key end

     0   :  { %vm23_vm0 = vcmask 254976   ;;  %s248_s0 = inlined_call_operand.vmem [shape: f32[2,32], index: 0, kind: input, shape index: {}]   ;;  %s249_s1 = inlined_call_operand.vmem [shape: f32[1,32], index: 1, kind: input, shape index: {}]   ;;  %s250_s2 = inlined_call_operand.vmem [shape: f32[1,32], index: 2, kind: input, shape index: {}]   ;;  %s251_s3 = inlined_call_operand.vmem [shape: bf16[32,128], index: 3, kind: input, shape index: {}]   ;;  %s252_s4 = inlined_call_operand.vmem [shape: f32[1,128], index: 4, kind: input, shape index: {}]   ;;  %s253_s5 = inlined_call_operand.hbm [shape: f32[2,128], index: 5, kind: output, shape index: {}]  }
   0x1   :  { %v22_v0 = vld [vmem:[%s248_s0] sm:$0x3] }
   0x2   :  { %v24_v1 = vsel %vm23_vm0, %v22_v0, 0.0 }
   0x3   :  { %25 = vadd.xlane.f32.xlu0 %v24_v1 }
   0x4   :  { %10 = vsyncpa [#allocation3], 0  ;;  %v157_v7 = vld [vmem:[%s251_s3] sm:$0xff]   ;;  %v185_v8 = vmov 0.0   ;;  %v158_v9 = vld [vmem:[%s251_s3 + $0x8] sm:$0xff]   ;;  %vm186_vm1 = vmmov 0  }
   0x5   :  { %146 = vmatprep.subr.bf16.mxu0 %v185_v8  ;;  %150 = vmatprep.mubr.msk.bf16.mxu0 %vm186_vm1, %v185_v8  ;;  %v137_v14 = vld [vmem:[%s249_s1] ss:$0 sm:$0xff]  ;;  %vm78_vm2 = vcmask 261120   ;;  %s187_s28 = smov [#allocation2]  }
   0x6   :  { %147 = vmatpush3.bf16.msra.mxu0 %v157_v7  ;;  %v138_v16 = vld [vmem:[%s250_s2] ss:$0 sm:$0xff]  ;;  %s129_s29 = sshll.u32 %s187_s28, 4  ;;  %s130_s29 = int_to_ptr.vmem [resolvable:$true] %s129_s29 }
   0x7   :  { %148 = vmatprep.subr.bf16.mxu0 %v185_v8  ;;  %v139_v20 = vld [vmem:[%s252_s4] ss:$0 sm:$0xff]  ;;  %s161_s1 = scalar_lea.vmem %s130_s29, 32  ;;  %p166_p1 = scmp.lt.s32.totalorder %s130_s29, %s130_s29 }
   0x8   :  { %p162_p0 = scmp.ne.s32.totalorder %s130_s29, %s161_s1  ;;  %p167_p2 = scmp.lt.s32.totalorder %s161_s1, %s161_s1 }
   0xa   :  { %149 = vmatpush3.bf16.msra.mxu0 %v158_v9  ;;  %p168_p3 = por %p167_p2, %p166_p1 }
   0xc   :  { %p169_p4 = pnand %p168_p3, %p162_p0 }
  0x90   :  { %v26_v2 = vpop.xlane.xlu0 %25 }
  0x91   :  { %v28_v3 = vmul.f32 0.03125, %v26_v2 }
  0x93   :  { %v29_v4 = vsub.f32 %v22_v0, %v28_v3 }
  0x95   :  { %v30_v5 = vmul.f32 %v29_v4, %v29_v4 }
  0x97   :  { %v31_v6 = vsel %vm23_vm0, %v30_v5, 0.0 }
  0x98   :  { %32 = vadd.xlane.f32.xlu0 %v31_v6 }
 0x125   :  { %v33_v10 = vpop.xlane.xlu0 %32 }
 0x126   :  { %v34_v11 = vmul.f32 0.03125, %v33_v10 }
 0x128   :  { %v35_v12 = vadd.f32 1e-05, %v34_v11 }
 0x12a   :  { %159 = vrsqrt.f32 %v35_v12 }
 0x134   :  { %v160_v13 = vpop.eup %159 }
 0x135   :  { %v37_v15 = vmul.f32 %v160_v13, %v29_v4 }
 0x137   :  { %v45_v17 = vmul.f32 %v137_v14, %v37_v15 }
 0x139   :  { %v53_v18 = vadd.f32 %v138_v16, %v45_v17 }
 0x13b   :  { %v54_v19 = vpack.c.bf16 %v53_v18, %v53_v18 }
 0x13d   :  { %151 = vmatmul.mubr.msk.bf16.vlgmr.msra.gmra.mrb[0].mxu0 %vm78_vm2, %v54_v19 }
 0x210   :  { %v116_v21 = vpop.f32.mrb[0].mxu0 }
 0x211   :  { %v117_v22 = vadd.f32 %v139_v20, %v116_v21  ;;  %v152_v23 = vpop.f32.mrb[1].mxu0 }
 0x212   :  { %v119_v24 = vpop.f32.mrb[2].mxu0 }
 0x213   :  { %122 = vst [vmem:[#allocation2] sm:$0x3] %v117_v22  ;;  %v153_v25 = vpop.f32.mrb[3].mxu0 }
 0x214   :  { %172 = shalt.err (!%p169_p4)
}
 0x215   :  { %s173_s4 = scalar_lea.hbm %s253_s5, 32 }
 0x216   :  { %p174_p5 = scmp.ne.s32.totalorder %s253_s5, %s173_s4  ;;  %p177_p6 = scmp.lt.u32.totalorder %s173_s4, %s253_s5 }
 0x218   :  { %p179_p7 = pnand %p177_p6, %p174_p5 }
 0x21a   :  { %182 = shalt.err (!%p179_p7)
}
 0x21b   :  { %132 = dma.vmem_to_hbm [thread:$0]  %s130_s29, 32, %s253_s5, [#allocation3]  }
 0x21c   :  { %183 = dma.done.wait [#allocation3], 32  }
 0x21d   :  { %184 = vsyncadd [#allocation3], 4294967264 }
 0x21e   :  { %136 = vsyncpa [#allocation3], 1 }

// kernel: vit_forward.4
= control target key start
LH: loop header
LB: loop body
LE: loop exit
PB: predicated region body
PF: predicated region fallthrough
CT: control target
= control target key end

     0   :  { %s2610_s25 = smov 0   ;;  %s2612_s26 = smov 0   ;;  %s2984_s0 = inlined_call_operand.vmem [shape: f32[2,24,32], index: 0, kind: input, shape index: {}]   ;;  %s2985_s1 = inlined_call_operand.vmem [shape: f32[2,1,32], index: 1, kind: input, shape index: {}]   ;;  %s2986_s2 = inlined_call_operand.vmem [shape: f32[2,1,32], index: 2, kind: input, shape index: {}]   ;;  %s2987_s3 = inlined_call_operand.vmem [shape: bf16[2,32,96], index: 3, kind: input, shape index: {}]   ;;  %s2988_s4 = inlined_call_operand.vmem [shape: f32[2,1,96], index: 4, kind: input, shape index: {}]   ;;  %s2989_s5 = inlined_call_operand.vmem [shape: bf16[2,32,32], index: 5, kind: input, shape index: {}]   ;;  %s2990_s6 = inlined_call_operand.vmem [shape: f32[2,1,32], index: 6, kind: input, shape index: {}]   ;;  %s2991_s7 = inlined_call_operand.vmem [shape: f32[2,1,32], index: 7, kind: input, shape index: {}]   ;;  %s2992_s8 = inlined_call_operand.vmem [shape: f32[2,1,32], index: 8, kind: input, shape index: {}]   ;;  %s2993_s9 = inlined_call_operand.vmem [shape: bf16[2,32,128], index: 9, kind: input, shape index: {}]   ;;  %s2994_s10 = inlined_call_operand.vmem [shape: f32[2,1,128], index: 10, kind: input, shape index: {}]   ;;  %s2995_s11 = inlined_call_operand.vmem [shape: bf16[2,128,32], index: 11, kind: input, shape index: {}]   ;;  %s2996_s12 = inlined_call_operand.vmem [shape: f32[2,1,32], index: 12, kind: input, shape index: {}]   ;;  %s2997_s13 = inlined_call_operand.vmem [shape: f32[2,24,32], index: 13, kind: output, shape index: {}]  }
   0x1   :  { %3002 = sst [smem:[#allocation8_spill]] %s2984_s0  ;;  %s2614_s27 = smov 0  }
   0x2   :  { %3003 = sst [smem:[#allocation9_spill]] %s2986_s2  ;;  %s2616_s28 = smov 0  }
   0x3   :  { %3004 = sst [smem:[#allocation10_spill]] %s2987_s3  ;;  %s2618_s29 = smov 0  }
   0x4   :  { %3005 = sst [smem:[#allocation11_spill]] %s2989_s5 }
   0x5   :  { %3006 = sst [smem:[#allocation12_spill]] %s2997_s13 }
   0x6 LB: > { %3007 = sst [smem:[#allocation2_spill]] %s2508_s25  ;;  %s32_s30 = sadd.s32 1, %s2516_s27  ;;  %s2524_s29 = sphi %s2618_s29, %s23_s29   ;;  %s2520_s28 = sphi %s2616_s28, %s3030_s28   ;;  %s2516_s27 = sphi %s2614_s27, %s3029_s27   ;;  %s2512_s26 = sphi %s2612_s26, %s3028_s26   ;;  %s2508_s25 = sphi %s2610_s25, %s3027_s25  }
   0x7   : > { %3008 = sst [smem:[#allocation3_spill]] %s2516_s27  ;;  %s35_s14 = sadd.s32 1, %s2520_s28 }
   0x8   : > { %3009 = sst [smem:[#allocation4_spill]] %s2520_s28  ;;  %p33_p0 = scmp.ge.s32.totalorder %s32_s30, 2 }
   0x9   : > { %3010 = sst [smem:[#allocation5_spill]] %s2524_s29  ;;  %p2100_p1 = scmp.ge.s32.totalorder %s2524_s29, 1 }
   0xa   : > { %p503_p2 = scmp.lt.s32.totalorder %s2524_s29, 5  ;;  %s3032_s30 = smov (%p33_p0, %s32_s30), 0 }
   0xb   : > { %3011 = sst [smem:[#allocation6_spill]] %s3032_s30  ;;  %s3034_s14 = smov (!%p33_p0, %s35_s14), %s2520_s28 }
   0xc   : > { %p504_p3 = pnand %p2100_p1, %p503_p2  ;;  %p37_p4 = scmp.ge.s32.totalorder %s3034_s14, 2 }
   0xd   : > { %p591_p5 = scmp.lt.s32.totalorder (!%p504_p3), %s2512_s26, 1  ;;  %p596_p6 = scmp.lt.s32.totalorder (!%p504_p3), %s2508_s25, 1 }
   0xe   : > { %s3036_s14 = smov (%p37_p4, %s3034_s14), 0  ;;  %507 = sbr.rel (%p504_p3) target bundleno = 4263 (0x10a7), region = 72 }
   0xf   : > { %3012 = sst [smem:[#allocation7_spill]] %s3036_s14  ;;  %s3014_s0 = sld [smem:[#allocation8_spill]] (!%p504_p3) }
  0x10   : > { %s3015_s3 = sld [smem:[#allocation10_spill]] (!%p504_p3)  ;;  %s3016_s5 = sld [smem:[#allocation11_spill]] (!%p504_p3) }
  0x15   : > { %s3038_s26 = smov (!%p591_p5, %s2512_s26), 1 }
  0x16   : > { %s2644_s15 = scalar_select %p596_p6, %s2508_s25, 1 }
  0x17   : > { %s2336_s16 = smul.u32 24, %s3038_s26 }
  0x18   : > { %s2158_s30 = sshll.u32 %s2644_s15, 4  ;;  %s631_s13 = scalar_lea.vmem %s2994_s10, %s2644_s15 }
  0x19   : > { %s595_s14 = scalar_lea.vmem %s3014_s0, %s2336_s16  ;;  %s2661_s29 = scalar_lea.vmem %s3015_s3, %s2158_s30 }
  0x1a   : > { %s2670_s19 = scalar_lea.vmem %s3016_s5, %s2158_s30  ;;  %s2687_s26 = scalar_lea.vmem %s2993_s9, %s2158_s30 }
  0x1b   : > { %s2161_s5 = sshll.u32 %s2644_s15, 6  ;;  %s639_s23 = scalar_lea.vmem %s2996_s12, %s2644_s15 }
  0x1c   : > { %s2701_s0 = scalar_lea.vmem %s2995_s11, %s2161_s5  ;;  %s3017_s3 = sld [smem:[#allocation12_spill]] }
  0x1d   : > { %s3018_s30 = sld [smem:[#allocation2_spill]] }
  0x22   : > { %s2706_s2 = scalar_lea.vmem %s3017_s3, %s2336_s16 }
  0x23   : > { %p2111_p7 = scmp.ne.s32.totalorder %s3018_s30, 0 }
  0x24   : > { %v650_v0 = vld [vmem:[%s595_s14] sm:$0xff] (!%p2111_p7)  ;;  %vm653_vm0 = vcmask (!%p2111_p7), 261120   ;;  %v651_v1 = vld [vmem:[%s595_s14 + $0x8] sm:$0xff] (!%p2111_p7)  ;;  %v652_v2 = vld [vmem:[%s595_s14 + $0x10] sm:$0xff] (!%p2111_p7) }
  0x25   : > { %649 = sbr.rel (%p2111_p7) target bundleno = 44 (0x2c), region = 76  ;;  %654 = vst.msk [vmem:[%s2706_s2] sm:$0xff] (!%p2111_p7), %vm653_vm0, %v650_v0  ;;  %655 = vst.msk [vmem:[%s2706_s2 + $0x8] sm:$0xff] (!%p2111_p7), %vm653_vm0, %v651_v1 }
  0x26   : > { %656 = vst.msk [vmem:[%s2706_s2 + $0x10] sm:$0xff] (!%p2111_p7), %vm653_vm0, %v652_v2 }
  0x2c PF: > { %v2713_v3 = vld [vmem:[%s2706_s2] sm:$0xff]  ;;  %vm660_vm1 = vcmask 261120   ;;  %v2719_v5 = vld [vmem:[%s2706_s2 + $0x8] sm:$0xff]  ;;  %s3020_s25 = sld [smem:[#allocation9_spill]]  ;;  %s3022_s21 = scalar_lea.vmem %s2988_s4, %s2644_s15  ;;  %vm811_vm2 = vcmask 64512   ;;  %v800_v1 = vlaneseq  ;;  %vm878_vm4 = vcmask 195584  }
  0x2d   : > { %v2716_v4 = vld [vmem:[%s2706_s2 + $0x10] sm:$0xff]  ;;  %v661_v6 = vsel %vm660_vm1, %v2713_v3, 0.0  ;;  %v664_v8 = vsel %vm660_vm1, %v2719_v5, 0.0  ;;  %v2406_v24 = vld [vmem:[%s2661_s29] sm:$0xff]   ;;  %v2407_v25 = vld [vmem:[%s2661_s29 + $0x8] sm:$0xff]   ;;  %s3019_s29 = scalar_lea.vmem %s2985_s1, %s2644_s15  ;;  %s2526_s22 = smov 96  }
  0x2e   : > { %v667_v7 = vsel %vm660_vm1, %v2716_v4, 0.0  ;;  %662 = vadd.xlane.f32.xlu0 %v661_v6  ;;  %2216 = vmatprep.subr.bf16.mxu0 %v2406_v24  ;;  %v2112_v37 = vld [vmem:[%s3019_s29] ss:$0 sm:$0xff]  ;;  %v2766_v2 = vand.u32 127, %v800_v1  ;;  %s2527_s24 = smov 64   ;;  %s2528_s27 = smov 120  }
  0x2f   : > { %668 = vadd.xlane.f32.xlu1 %v667_v7  ;;  %2217 = vmatpush3.bf16.msra.mxu0 %v2406_v24  ;;  %v2114_v51 = vld [vmem:[%s3022_s21] ss:$0 sm:$0xff]  ;;  %s2529_s28 = smov 88   ;;  %vm925_vm5 = vcmask 1043456   ;;  %s2530_s30 = smov 56   ;;  %vm1529_vm6 = vcmask 130048  }
  0x30   : > { %2218 = vmatprep.subr.bf16.mxu0 %v2407_v25  ;;  %vm802_vm3 = vcmp.lt.s32.totalorder %v2766_v2, 17  ;;  %s2531_s3 = smov 80   ;;  %s2532_s5 = smov 112  }
  0x31   : > { %s2533_s29 = smov 48   ;;  %s2534_s14 = smov 72  }
  0x32   : > { %665 = vadd.xlane.f32.xlu0 %v664_v8  ;;  %s3021_s17 = scalar_lea.vmem %s3020_s25, %s2644_s15  ;;  %s2535_s16 = smov 104  }
  0x33   : > { %2219 = vmatpush3.bf16.msra.mxu0 %v2407_v25  ;;  %v2113_v43 = vld [vmem:[%s3021_s17] ss:$0 sm:$0xff]  ;;  %s2536_s25 = smov 40   ;;  %s2537_s17 = smov 8  }
  0x34   : > { %s2538_s18 = smov 16   ;;  %s2539_s20 = smov 24  }
  0xbb   : > { %v663_v9 = vpop.xlane.xlu0 %662 }
  0xbc   : > { %v669_v10 = vpop.xlane.xlu1 %668  ;;  %v671_v11 = vmul.f32 0.03125, %v663_v9 }
  0xbd   : > { %v673_v12 = vmul.f32 0.03125, %v669_v10 }
  0xbe   : > { %v674_v13 = vsub.f32 %v2713_v3, %v671_v11 }
  0xbf   : > { %v676_v14 = vsub.f32 %v2716_v4, %v673_v12  ;;  %v666_v15 = vpop.xlane.xlu0 %665 }
  0xc0   : > { %v672_v16 = vmul.f32 0.03125, %v666_v15  ;;  %v677_v17 = vmul.f32 %v674_v13, %v674_v13 }
  0xc1   : > { %v679_v18 = vmul.f32 %v676_v14, %v676_v14 }
  0xc2   : > { %v675_v19 = vsub.f32 %v2719_v5, %v672_v16  ;;  %v680_v20 = vsel %vm660_vm1, %v677_v17, 0.0 }
  0xc3   : > { %681 = vadd.xlane.f32.xlu1 %v680_v20  ;;  %v686_v21 = vsel %vm660_vm1, %v679_v18, 0.0 }
  0xc4   : > { %v678_v22 = vmul.f32 %v675_v19, %v675_v19 }
  0xc6   : > { %v683_v23 = vsel %vm660_vm1, %v678_v22, 0.0 }
  0xc7   : > { %687 = vadd.xlane.f32.xlu1 %v686_v21  ;;  %684 = vadd.xlane.f32.xlu0 %v683_v23 }
 0x150   : > { %v682_v26 = vpop.xlane.xlu1 %681 }
 0x151   : > { %v689_v27 = vmul.f32 0.03125, %v682_v26 }
 0x153   : > { %v692_v28 = vadd.f32 1e-05, %v689_v27 }
 0x154   : > { %v688_v29 = vpop.xlane.xlu1 %687  ;;  %v685_v30 = vpop.xlane.xlu0 %684 }
 0x155   : > { %2420 = vrsqrt.f32 %v692_v28  ;;  %v691_v31 = vmul.f32 0.03125, %v688_v29  ;;  %v690_v32 = vmul.f32 0.03125, %v685_v30 }
 0x157   : > { %v694_v33 = vadd.f32 1e-05, %v691_v31  ;;  %v693_v34 = vadd.f32 1e-05, %v690_v32 }
 0x159   : > { %2422 = vrsqrt.f32 %v694_v33 }
 0x15a   : > { %2424 = vrsqrt.f32 %v693_v34 }
 0x15f   : > { %v2421_v35 = vpop.eup %2420 }
 0x160   : > { %v698_v36 = vmul.f32 %v2421_v35, %v674_v13 }
 0x162   : > { %v708_v42 = vmul.f32 %v2112_v37, %v698_v36 }
 0x163   : > { %v2423_v38 = vpop.eup %2422 }
 0x164   : > { %v2425_v39 = vpop.eup %2424  ;;  %v700_v40 = vmul.f32 %v2423_v38, %v676_v14  ;;  %v718_v47 = vadd.f32 %v2113_v43, %v708_v42 }
 0x165   : > { %v699_v41 = vmul.f32 %v2425_v39, %v675_v19 }
 0x166   : > { %v710_v44 = vmul.f32 %v2112_v37, %v700_v40 }
 0x167   : > { %v709_v45 = vmul.f32 %v2112_v37, %v699_v41 }
 0x168   : > { %v720_v46 = vadd.f32 %v2113_v43, %v710_v44 }
 0x169   : > { %v719_v48 = vadd.f32 %v2113_v43, %v709_v45 }
 0x16a   : > { %v722_v49 = vpack.c.bf16 %v720_v46, %v720_v46 }
 0x16b   : > { %v721_v50 = vpack.c.bf16 %v719_v48, %v718_v47 }
 0x16d   : > { %2220 = vmatprep.mubr.msk.bf16.mxu0 %vm660_vm1, %v721_v50 }
 0x16e   : > { %2221 = vmatmul.mubr.msk.bf16.vlgmr.msra.gmra.mrb[0].mxu0 %vm660_vm1, %v722_v49 }
 0x241   : > { %v2222_v52 = vpop.f32.mrb[0].mxu0 }
 0x242   : > { %v795_v53 = vadd.f32 %v2222_v52, %v2114_v51  ;;  %v786_v54 = vpop.f32.mrb[1].mxu0 }
 0x243   : > { %v2223_v55 = vpop.f32.mrb[2].mxu0  ;;  %v787_v58 = vadd.f32 %v2114_v51, %v786_v54 }
 0x244   : > { %v2752_v56 = vpack.c.bf16 %v795_v53, %v795_v53  ;;  %v789_v57 = vpop.f32.mrb[3].mxu0 }
 0x245   : > { %v790_v59 = vadd.f32 %v2114_v51, %v789_v57 }
 0x246   : > { %809 = vrot.lane.b32.xlu1 %v2752_v56, %s2526_s22 }
 0x247   : > { %v2755_v60 = vpack.c.bf16 %v790_v59, %v787_v58 }
 0x249   : > { %807 = vrot.lane.b32.xlu0 %v2755_v60, %s2526_s22  ;;  %2228 = vmatprep.mubr.msk.bf16.mxu0 %vm811_vm2, %v2755_v60  ;;  %s3023_s22 = scalar_lea.vmem %s2990_s6, %s2644_s15 }
 0x2b8   : > { %v810_v63 = vpop.permute.xlu1 %809 }
 0x2b9   : > { %v822_v0 = vsel %vm811_vm2, %v810_v63, 0 }
 0x2bb   : > { %v808_v61 = vpop.permute.xlu0 %807 }
 0x2bc   : > { %v819_v62 = vsel %vm811_vm2, %v808_v61, 0  ;;  %2324 = vmatprep.subr.msk.bf16.mxu0 %vm811_vm2, %v808_v61 }
 0x2bd   : > { %2225 = vmatpush3.bf16.xpose.msra.mxu0 %v819_v62 }
 0x2be   : > { %2325 = vmatprep.subr.msk.bf16.mxu0 %vm811_vm2, %v810_v63 }
 0x2c5   : > { %2227 = vmatpush3.bf16.xpose.msra.mxu0 %v822_v0 }
 0x2cc   : > { %2229 = vmatmul.mubr.msk.bf16.vlgmr.msra.gmra.mrb[4].mxu0 %vm811_vm2, %v2752_v56 }
 0x39f   : > { %v2230_v6 = vpop.f32.mrb[4].mxu0 }
 0x3a0   : > { %v858_v7 = vpop.f32.mrb[5].mxu0  ;;  %v874_v11 = vmul.f32 0.35355338, %v2230_v6 }
 0x3a1   : > { %v872_v8 = vmul.f32 0.35355338, %v858_v7  ;;  %v2231_v9 = vpop.f32.mrb[6].mxu0 }
 0x3a2   : > { %v861_v10 = vpop.f32.mrb[7].mxu0  ;;  %v877_v17 = vsel %vm802_vm3, %v874_v11, -1e+30 }
 0x3a3   : > { %v873_v12 = vmul.f32 0.35355338, %v861_v10  ;;  %v875_v13 = vsel %vm802_vm3, %v872_v8, -1e+30  ;;  %v885_v18 = vsel %vm878_vm4, %v877_v17, -inf }
 0x3a4   : > { %v879_v14 = vsel %vm878_vm4, %v875_v13, -inf }
 0x3a5   : > { %880 = vmax.xlane.f32.xlu1 %v879_v14  ;;  %v876_v15 = vsel %vm802_vm3, %v873_v12, -1e+30 }
 0x3a6   : > { %v882_v16 = vsel %vm878_vm4, %v876_v15, -inf }
 0x3a7   : > { %883 = vmax.xlane.f32.xlu0 %v882_v16 }
 0x3ab   : > { %886 = vmax.xlane.f32.xlu0 %v885_v18 }
 0x432   : > { %v881_v19 = vpop.xlane.xlu1 %880 }
 0x433   : > { %v888_v22 = vsub.f32 %v875_v13, %v881_v19 }
 0x434   : > { %v884_v20 = vpop.xlane.xlu0 %883 }
 0x435   : > { %v889_v21 = vsub.f32 %v876_v15, %v884_v20  ;;  %v891_v26 = vmul.f32 1.442695, %v888_v22 }
 0x437   : > { %v893_v23 = vmul.f32 1.442695, %v889_v21 }
 0x438   : > { %v887_v24 = vpop.xlane.xlu0 %886 }
 0x439   : > { %2426 = vpow2.f32 %v893_v23  ;;  %v890_v25 = vsub.f32 %v877_v17, %v887_v24 }
 0x43b   : > { %v895_v27 = vmul.f32 1.442695, %v890_v25 }
 0x43d   : > { %2428 = vpow2.f32 %v895_v27 }
 0x43e   : > { %2430 = vpow2.f32 %v891_v26 }
 0x443   : > { %v2427_v28 = vpop.eup %2426 }
 0x444   : > { %v900_v29 = vsel %vm878_vm4, %v2427_v28, 0.0 }
 0x445   : > { %901 = vadd.xlane.f32.xlu0 %v900_v29 }
 0x447   : > { %v2429_v30 = vpop.eup %2428 }
 0x448   : > { %v903_v31 = vsel %vm878_vm4, %v2429_v30, 0.0  ;;  %v2431_v32 = vpop.eup %2430 }
 0x449   : > { %904 = vadd.xlane.f32.xlu1 %v903_v31  ;;  %v897_v33 = vsel %vm878_vm4, %v2431_v32, 0.0 }
 0x44d   : > { %898 = vadd.xlane.f32.xlu1 %v897_v33 }
 0x45b   : > { %914 = vrot.lane.b32.xlu0 %v2755_v60, %s2527_s24 }
 0x45e   : > { %916 = vrot.lane.b32.xlu1 %v2752_v56, %s2527_s24 }
 0x45f   : > { %977 = vrot.lane.b32.xlu0 %v2755_v60, %s2528_s27 }
 0x462   : > { %981 = vrot.lane.b32.xlu1 %v2755_v60, %s2529_s28 }
 0x466   : > { %983 = vrot.lane.b32.xlu1 %v2752_v56, %s2529_s28 }
 0x46a   : > { %979 = vrot.lane.b32.xlu1 %v2752_v56, %s2528_s27  ;;  %s3024_s27 = scalar_lea.vmem %s2991_s7, %s2644_s15 }
 0x4d2   : > { %v902_v34 = vpop.xlane.xlu0 %901 }
 0x4d6   : > { %v905_v35 = vpop.xlane.xlu1 %904  ;;  %v915_v36 = vpop.permute.xlu0 %914 }
 0x4d7   : > { %2232 = vmatprep.subr.bf16.mxu0 %v915_v36  ;;  %2432 = vrcp.f32 %v905_v35 }
 0x4d8   : > { %2233 = vmatpush3.bf16.msra.mxu0 %v915_v36  ;;  %2434 = vrcp.f32 %v902_v34 }
 0x4da   : > { %v899_v37 = vpop.xlane.xlu1 %898  ;;  %v978_v49 = vpop.permute.xlu0 %977 }
 0x4db   : > { %2436 = vrcp.f32 %v899_v37 }
 0x4de   : > { %v917_v38 = vpop.permute.xlu1 %916 }
 0x4df   : > { %v927_v39 = vsel %vm925_vm5, %v917_v38, 0  ;;  %2326 = vmatprep.subr.msk.bf16.mxu0 %vm925_vm5, %v917_v38 }
 0x4e0   : > { %2235 = vmatpush3.bf16.msra.mxu0 %v927_v39 }
 0x4e1   : > { %v2433_v40 = vpop.eup %2432 }
 0x4e2   : > { %v982_v41 = vpop.permute.xlu1 %981  ;;  %v2435_v42 = vpop.eup %2434  ;;  %v911_v44 = vmul.f32 %v2433_v40, %v2429_v30 }
 0x4e3   : > { %2327 = vmatprep.subr.msk.bf16.mxu0 %vm811_vm2, %v982_v41  ;;  %v910_v46 = vmul.f32 %v2435_v42, %v2427_v28  ;;  %v992_v50 = vsel %vm811_vm2, %v982_v41, 0 }
 0x4e4   : > { %v913_v48 = vpack.c.bf16 %v911_v44, %v911_v44 }
 0x4e5   : > { %v2437_v43 = vpop.eup %2436 }
 0x4e6   : > { %v909_v45 = vmul.f32 %v2437_v43, %v2431_v32  ;;  %v984_v51 = vpop.permute.xlu1 %983 }
 0x4e7   : > { %v995_v52 = vsel %vm811_vm2, %v984_v51, 0 }
 0x4e8   : > { %v912_v47 = vpack.c.bf16 %v910_v46, %v909_v45 }
 0x4ea   : > { %2236 = vmatprep.mubr.msk.bf16.mxu0 %vm878_vm4, %v912_v47  ;;  %v980_v53 = vpop.permute.xlu1 %979 }
 0x4eb   : > { %2237 = vmatmul.mubr.msk.bf16.vlgmr.msra.gmra.mrb[8].mxu0 %vm878_vm4, %v913_v48 }
 0x4ec   : > { %2241 = vmatpush3.bf16.xpose.msra.mxu0 %v992_v50  ;;  %2244 = vmatprep.mubr.msk.bf16.mxu0 %vm811_vm2, %v978_v49 }
 0x4ed   : > { %2328 = vmatprep.subr.msk.bf16.mxu0 %vm811_vm2, %v984_v51 }
 0x4f4   : > { %2243 = vmatpush3.bf16.xpose.msra.mxu0 %v995_v52 }
 0x4fb   : > { %2245 = vmatmul.mubr.msk.bf16.vlgmr.msra.gmra.mrb[12].mxu0 %vm811_vm2, %v980_v53 }
 0x5be   : > { %v2797_v54 = vpop.f32.mrb[8].mxu0 }
 0x5bf   : > { %v2799_v55 = vpop.f32.mrb[9].mxu0 }
 0x5c0   : > { %v2239_v57 = vpop.f32.mrb[10].mxu0 }
 0x5c1   : > { %v2801_v58 = vpop.f32.mrb[11].mxu0 }
 0x5ce   : > { %v2246_v59 = vpop.f32.mrb[12].mxu0 }
 0x5cf   : > { %v1031_v61 = vpop.f32.mrb[13].mxu0  ;;  %v1047_v62 = vmul.f32 0.35355338, %v2246_v59 }
 0x5d0   : > { %v1045_v63 = vmul.f32 0.35355338, %v1031_v61  ;;  %v2247_v0 = vpop.f32.mrb[14].mxu0 }
 0x5d1   : > { %v1034_v1 = vpop.f32.mrb[15].mxu0  ;;  %v1050_v10 = vsel %vm802_vm3, %v1047_v62, -1e+30 }
 0x5d2   : > { %v1046_v6 = vmul.f32 0.35355338, %v1034_v1  ;;  %v1048_v7 = vsel %vm802_vm3, %v1045_v63, -1e+30  ;;  %v1057_v12 = vsel %vm878_vm4, %v1050_v10, -inf }
 0x5d3   : > { %v1051_v8 = vsel %vm878_vm4, %v1048_v7, -inf }
 0x5d4   : > { %1052 = vmax.xlane.f32.xlu0 %v1051_v8  ;;  %v1049_v9 = vsel %vm802_vm3, %v1046_v6, -1e+30 }
 0x5d5   : > { %v1054_v11 = vsel %vm878_vm4, %v1049_v9, -inf }
 0x5d6   : > { %1055 = vmax.xlane.f32.xlu1 %v1054_v11 }
 0x5d8   : > { %1058 = vmax.xlane.f32.xlu0 %v1057_v12 }
 0x661   : > { %v1053_v13 = vpop.xlane.xlu0 %1052 }
 0x662   : > { %v1060_v14 = vsub.f32 %v1048_v7, %v1053_v13 }
 0x663   : > { %v1056_v15 = vpop.xlane.xlu1 %1055 }
 0x664   : > { %v1063_v16 = vmul.f32 1.442695, %v1060_v14  ;;  %v1061_v17 = vsub.f32 %v1049_v9, %v1056_v15 }
 0x665   : > { %v1059_v18 = vpop.xlane.xlu0 %1058 }
 0x666   : > { %2438 = vpow2.f32 %v1063_v16  ;;  %v1065_v19 = vmul.f32 1.442695, %v1061_v17  ;;  %v1062_v20 = vsub.f32 %v1050_v10, %v1059_v18 }
 0x668   : > { %2440 = vpow2.f32 %v1065_v19  ;;  %v1067_v21 = vmul.f32 1.442695, %v1062_v20 }
 0x66a   : > { %2442 = vpow2.f32 %v1067_v21 }
 0x670   : > { %v2439_v22 = vpop.eup %2438 }
 0x671   : > { %v1069_v23 = vsel %vm878_vm4, %v2439_v22, 0.0 }
 0x672   : > { %v2441_v24 = vpop.eup %2440  ;;  %1070 = vadd.xlane.f32.xlu0 %v1069_v23 }
 0x673   : > { %v1072_v27 = vsel %vm878_vm4, %v2441_v24, 0.0 }
 0x674   : > { %v2443_v25 = vpop.eup %2442 }
 0x675   : > { %v1075_v26 = vsel %vm878_vm4, %v2443_v25, 0.0 }
 0x676   : > { %1076 = vadd.xlane.f32.xlu1 %v1075_v26  ;;  %1073 = vadd.xlane.f32.xlu0 %v1072_v27 }
 0x687   : > { %1088 = vrot.lane.b32.xlu1 %v2752_v56, %s2530_s30 }
 0x68b   : > { %1152 = vrot.lane.b32.xlu1 %v2755_v60, %s2531_s3 }
 0x68c   : > { %1086 = vrot.lane.b32.xlu0 %v2755_v60, %s2530_s30 }
 0x68f   : > { %1154 = vrot.lane.b32.xlu1 %v2752_v56, %s2531_s3  ;;  %s3025_s3 = scalar_lea.vmem %s2992_s8, %s2644_s15 }
 0x690   : > { %1148 = vrot.lane.b32.xlu0 %v2755_v60, %s2532_s5 }
 0x693   : > { %1150 = vrot.lane.b32.xlu1 %v2752_v56, %s2532_s5 }
 0x6ff   : > { %v1071_v28 = vpop.xlane.xlu0 %1070 }
 0x700   : > { %2444 = vrcp.f32 %v1071_v28 }
 0x703   : > { %v1074_v29 = vpop.xlane.xlu0 %1073  ;;  %v1077_v30 = vpop.xlane.xlu1 %1076 }
 0x704   : > { %2446 = vrcp.f32 %v1074_v29 }
 0x705   : > { %2448 = vrcp.f32 %v1077_v30 }
 0x707   : > { %v1087_v31 = vpop.permute.xlu0 %1086  ;;  %v1089_v32 = vpop.permute.xlu1 %1088 }
 0x708   : > { %2248 = vmatprep.subr.bf16.mxu1 %v1087_v31  ;;  %v1098_v34 = vsel %vm925_vm5, %v1089_v32, 0 }
 0x709   : > { %2249 = vmatpush3.bf16.msra.mxu1 %v1087_v31 }
 0x70a   : > { %2329 = vmatprep.subr.msk.bf16.mxu1 %vm925_vm5, %v1089_v32  ;;  %v2445_v33 = vpop.eup %2444 }
 0x70b   : > { %v1153_v35 = vpop.permute.xlu1 %1152  ;;  %v1081_v38 = vmul.f32 %v2445_v33, %v2439_v22  ;;  %v1149_v43 = vpop.permute.xlu0 %1148 }
 0x70c   : > { %v1163_v44 = vsel %vm811_vm2, %v1153_v35, 0 }
 0x70d   : > { %2251 = vmatpush3.bf16.msra.mxu1 %v1098_v34 }
 0x70e   : > { %v2447_v36 = vpop.eup %2446  ;;  %2330 = vmatprep.subr.msk.bf16.mxu1 %vm811_vm2, %v1153_v35 }
 0x70f   : > { %v2449_v37 = vpop.eup %2448  ;;  %v1082_v39 = vmul.f32 %v2447_v36, %v2441_v24  ;;  %v1155_v45 = vpop.permute.xlu1 %1154 }
 0x710   : > { %v1083_v40 = vmul.f32 %v2449_v37, %v2443_v25  ;;  %v1166_v46 = vsel %vm811_vm2, %v1155_v45, 0 }
 0x711   : > { %v1084_v41 = vpack.c.bf16 %v1082_v39, %v1081_v38 }
 0x712   : > { %v1085_v42 = vpack.c.bf16 %v1083_v40, %v1083_v40 }
 0x713   : > { %2252 = vmatprep.mubr.msk.bf16.mxu1 %vm878_vm4, %v1084_v41  ;;  %v1151_v47 = vpop.permute.xlu1 %1150 }
 0x714   : > { %2253 = vmatmul.mubr.msk.bf16.vlgmr.msra.gmra.mrb[0].mxu1 %vm878_vm4, %v1085_v42 }
 0x715   : > { %2260 = vmatprep.mubr.msk.bf16.mxu1 %vm811_vm2, %v1149_v43 }
 0x716   : > { %2257 = vmatpush3.bf16.xpose.msra.mxu1 %v1163_v44 }
 0x717   : > { %2331 = vmatprep.subr.msk.bf16.mxu1 %vm811_vm2, %v1155_v45 }
 0x71e   : > { %2259 = vmatpush3.bf16.xpose.msra.mxu1 %v1166_v46 }
 0x725   : > { %2261 = vmatmul.mubr.msk.bf16.vlgmr.msra.gmra.mrb[4].mxu1 %vm811_vm2, %v1151_v47 }
 0x7e7   : > { %v2831_v48 = vpop.f32.mrb[0].mxu1 }
 0x7e8   : > { %v2833_v49 = vpop.f32.mrb[1].mxu1 }
 0x7e9   : > { %v2255_v50 = vpop.f32.mrb[2].mxu1 }
 0x7ea   : > { %v2835_v51 = vpop.f32.mrb[3].mxu1 }
 0x7eb   : > { %v2391_v52 = vpack.i.bf16 %v2835_v51, %v2833_v49 }
 0x7f8   : > { %v2262_v53 = vpop.f32.mrb[4].mxu1 }
 0x7f9   : > { %v1202_v57 = vpop.f32.mrb[5].mxu1  ;;  %v1218_v59 = vmul.f32 0.35355338, %v2262_v53 }
 0x7fa   : > { %v1216_v61 = vmul.f32 0.35355338, %v1202_v57  ;;  %v2263_v62 = vpop.f32.mrb[6].mxu1 }
 0x7fb   : > { %v1205_v63 = vpop.f32.mrb[7].mxu1  ;;  %v1221_v8 = vsel %vm802_vm3, %v1218_v59, -1e+30 }
 0x7fc   : > { %v1217_v0 = vmul.f32 0.35355338, %v1205_v63  ;;  %v1219_v1 = vsel %vm802_vm3, %v1216_v61, -1e+30  ;;  %v1228_v10 = vsel %vm878_vm4, %v1221_v8, -inf }
 0x7fd   : > { %v1222_v6 = vsel %vm878_vm4, %v1219_v1, -inf }
 0x7fe   : > { %1223 = vmax.xlane.f32.xlu0 %v1222_v6  ;;  %v1220_v7 = vsel %vm802_vm3, %v1217_v0, -1e+30 }
 0x7ff   : > { %v1225_v9 = vsel %vm878_vm4, %v1220_v7, -inf }
 0x800   : > { %1226 = vmax.xlane.f32.xlu1 %v1225_v9 }
 0x802   : > { %1229 = vmax.xlane.f32.xlu0 %v1228_v10 }
 0x88b   : > { %v1224_v11 = vpop.xlane.xlu0 %1223 }
 0x88c   : > { %v1231_v12 = vsub.f32 %v1219_v1, %v1224_v11 }
 0x88d   : > { %v1227_v13 = vpop.xlane.xlu1 %1226 }
 0x88e   : > { %v1234_v14 = vmul.f32 1.442695, %v1231_v12  ;;  %v1232_v15 = vsub.f32 %v1220_v7, %v1227_v13 }
 0x88f   : > { %v1230_v16 = vpop.xlane.xlu0 %1229 }
 0x890   : > { %2450 = vpow2.f32 %v1234_v14  ;;  %v1236_v17 = vmul.f32 1.442695, %v1232_v15  ;;  %v1233_v18 = vsub.f32 %v1221_v8, %v1230_v16 }
 0x892   : > { %2452 = vpow2.f32 %v1236_v17  ;;  %v1238_v19 = vmul.f32 1.442695, %v1233_v18 }
 0x894   : > { %2454 = vpow2.f32 %v1238_v19 }
 0x89a   : > { %v2451_v20 = vpop.eup %2450 }
 0x89b   : > { %v1240_v21 = vsel %vm878_vm4, %v2451_v20, 0.0 }
 0x89c   : > { %v2453_v22 = vpop.eup %2452  ;;  %1241 = vadd.xlane.f32.xlu0 %v1240_v21 }
 0x89d   : > { %v1243_v25 = vsel %vm878_vm4, %v2453_v22, 0.0 }
 0x89e   : > { %v2455_v23 = vpop.eup %2454 }
 0x89f   : > { %v1246_v24 = vsel %vm878_vm4, %v2455_v23, 0.0 }
 0x8a0   : > { %1247 = vadd.xlane.f32.xlu1 %v1246_v24  ;;  %1244 = vadd.xlane.f32.xlu0 %v1243_v25 }
 0x8b1   : > { %1259 = vrot.lane.b32.xlu1 %v2752_v56, %s2533_s29 }
 0x8b5   : > { %1323 = vrot.lane.b32.xlu1 %v2755_v60, %s2534_s14 }
 0x8b6   : > { %1257 = vrot.lane.b32.xlu0 %v2755_v60, %s2533_s29 }
 0x8b9   : > { %1325 = vrot.lane.b32.xlu1 %v2752_v56, %s2534_s14 }
 0x8ba   : > { %1319 = vrot.lane.b32.xlu0 %v2755_v60, %s2535_s16 }
 0x8bd   : > { %1321 = vrot.lane.b32.xlu1 %v2752_v56, %s2535_s16 }
 0x929   : > { %v1242_v26 = vpop.xlane.xlu0 %1241 }
 0x92a   : > { %2456 = vrcp.f32 %v1242_v26 }
 0x92d   : > { %v1245_v27 = vpop.xlane.xlu0 %1244  ;;  %v1248_v28 = vpop.xlane.xlu1 %1247 }
 0x92e   : > { %2458 = vrcp.f32 %v1245_v27 }
 0x92f   : > { %2460 = vrcp.f32 %v1248_v28 }
 0x931   : > { %v1258_v29 = vpop.permute.xlu0 %1257  ;;  %v1260_v30 = vpop.permute.xlu1 %1259 }
 0x932   : > { %2264 = vmatprep.subr.bf16.mxu0 %v1258_v29  ;;  %v1269_v32 = vsel %vm925_vm5, %v1260_v30, 0 }
 0x933   : > { %2265 = vmatpush3.bf16.msra.mxu0 %v1258_v29 }
 0x934   : > { %2332 = vmatprep.subr.msk.bf16.mxu0 %vm925_vm5, %v1260_v30  ;;  %v2457_v31 = vpop.eup %2456 }
 0x935   : > { %v1324_v33 = vpop.permute.xlu1 %1323  ;;  %v1252_v36 = vmul.f32 %v2457_v31, %v2451_v20  ;;  %v1320_v41 = vpop.permute.xlu0 %1319 }
 0x936   : > { %v1334_v42 = vsel %vm811_vm2, %v1324_v33, 0 }
 0x937   : > { %2267 = vmatpush3.bf16.msra.mxu0 %v1269_v32 }
 0x938   : > { %v2459_v34 = vpop.eup %2458  ;;  %2333 = vmatprep.subr.msk.bf16.mxu0 %vm811_vm2, %v1324_v33 }
 0x939   : > { %v2461_v35 = vpop.eup %2460  ;;  %v1253_v37 = vmul.f32 %v2459_v34, %v2453_v22  ;;  %v1326_v43 = vpop.permute.xlu1 %1325 }
 0x93a   : > { %v1254_v38 = vmul.f32 %v2461_v35, %v2455_v23  ;;  %v1337_v44 = vsel %vm811_vm2, %v1326_v43, 0  ;;  %v2408_v35 = vld [vmem:[%s2670_s19] sm:$0xff]  }
 0x93b   : > { %v1255_v39 = vpack.c.bf16 %v1253_v37, %v1252_v36  ;;  %v2409_v36 = vld [vmem:[%s2670_s19 + $0x8] sm:$0xff]  }
 0x93c   : > { %v1256_v40 = vpack.c.bf16 %v1254_v38, %v1254_v38 }
 0x93d   : > { %2268 = vmatprep.mubr.msk.bf16.mxu0 %vm878_vm4, %v1255_v39  ;;  %v1322_v45 = vpop.permute.xlu1 %1321 }
 0x93e   : > { %2269 = vmatmul.mubr.msk.bf16.vlgmr.msra.gmra.mrb[16].mxu0 %vm878_vm4, %v1256_v40 }
 0x93f   : > { %2276 = vmatprep.mubr.msk.bf16.mxu0 %vm811_vm2, %v1320_v41 }
 0x940   : > { %2273 = vmatpush3.bf16.xpose.msra.mxu0 %v1334_v42 }
 0x941   : > { %2334 = vmatprep.subr.msk.bf16.mxu0 %vm811_vm2, %v1326_v43 }
 0x948   : > { %2275 = vmatpush3.bf16.xpose.msra.mxu0 %v1337_v44 }
 0x94f   : > { %2277 = vmatmul.mubr.msk.bf16.vlgmr.msra.gmra.mrb[20].mxu0 %vm811_vm2, %v1322_v45 }
 0xa11   : > { %v2270_v46 = vpop.f32.mrb[16].mxu0 }
 0xa12   : > { %v1305_v47 = vpop.f32.mrb[17].mxu0 }
 0xa13   : > { %v2271_v50 = vpop.f32.mrb[18].mxu0 }
 0xa14   : > { %v1308_v53 = vpop.f32.mrb[19].mxu0 }
 0xa15   : > { %v2396_v57 = vpack.i.bf16 %v1308_v53, %v1305_v47 }
 0xa22   : > { %v2278_v59 = vpop.f32.mrb[20].mxu0 }
 0xa23   : > { %v1373_v61 = vpop.f32.mrb[21].mxu0  ;;  %v1389_v62 = vmul.f32 0.35355338, %v2278_v59 }
 0xa24   : > { %v1387_v63 = vmul.f32 0.35355338, %v1373_v61  ;;  %v2279_v0 = vpop.f32.mrb[22].mxu0 }
 0xa25   : > { %v1376_v1 = vpop.f32.mrb[23].mxu0  ;;  %v1392_v10 = vsel %vm802_vm3, %v1389_v62, -1e+30 }
 0xa26   : > { %v1388_v6 = vmul.f32 0.35355338, %v1376_v1  ;;  %v1390_v7 = vsel %vm802_vm3, %v1387_v63, -1e+30  ;;  %v1399_v12 = vsel %vm878_vm4, %v1392_v10, -inf }
 0xa27   : > { %v1393_v8 = vsel %vm878_vm4, %v1390_v7, -inf }
 0xa28   : > { %1394 = vmax.xlane.f32.xlu0 %v1393_v8  ;;  %v1391_v9 = vsel %vm802_vm3, %v1388_v6, -1e+30 }
 0xa29   : > { %v1396_v11 = vsel %vm878_vm4, %v1391_v9, -inf }
 0xa2a   : > { %1397 = vmax.xlane.f32.xlu1 %v1396_v11 }
 0xa2c   : > { %1400 = vmax.xlane.f32.xlu0 %v1399_v12 }
 0xab5   : > { %v1395_v13 = vpop.xlane.xlu0 %1394 }
 0xab6   : > { %v1402_v14 = vsub.f32 %v1390_v7, %v1395_v13 }
 0xab7   : > { %v1398_v15 = vpop.xlane.xlu1 %1397 }
 0xab8   : > { %v1405_v16 = vmul.f32 1.442695, %v1402_v14  ;;  %v1403_v17 = vsub.f32 %v1391_v9, %v1398_v15 }
 0xab9   : > { %v1401_v18 = vpop.xlane.xlu0 %1400 }
 0xaba   : > { %2462 = vpow2.f32 %v1405_v16  ;;  %v1407_v19 = vmul.f32 1.442695, %v1403_v17  ;;  %v1404_v20 = vsub.f32 %v1392_v10, %v1401_v18 }
 0xabc   : > { %2464 = vpow2.f32 %v1407_v19  ;;  %v1409_v21 = vmul.f32 1.442695, %v1404_v20 }
 0xabe   : > { %2466 = vpow2.f32 %v1409_v21 }
 0xac4   : > { %v2463_v2 = vpop.eup %2462 }
 0xac5   : > { %v1411_v22 = vsel %vm878_vm4, %v2463_v2, 0.0 }
 0xac6   : > { %v2465_v23 = vpop.eup %2464  ;;  %1412 = vadd.xlane.f32.xlu0 %v1411_v22 }
 0xac7   : > { %v1414_v26 = vsel %vm878_vm4, %v2465_v23, 0.0 }
 0xac8   : > { %v2467_v24 = vpop.eup %2466 }
 0xac9   : > { %v1417_v25 = vsel %vm878_vm4, %v2467_v24, 0.0 }
 0xaca   : > { %1418 = vadd.xlane.f32.xlu1 %v1417_v25  ;;  %1415 = vadd.xlane.f32.xlu0 %v1414_v26 }
 0xadb   : > { %1430 = vrot.lane.b32.xlu1 %v2752_v56, %s2536_s25 }
 0xadf   : > { %2392 = vrot.lane.b32.xlu1 %v2391_v52, %s2537_s17 }
 0xae0   : > { %1428 = vrot.lane.b32.xlu0 %v2755_v60, %s2536_s25 }
 0xae3   : > { %1497 = vrot.lane.b32.xlu1 %v2831_v48, %s2537_s17 }
 0xae4   : > { %2397 = vrot.lane.b32.xlu0 %v2396_v57, %s2538_s18 }
 0xae7   : > { %1509 = vrot.lane.b32.xlu1 %v2270_v46, %s2538_s18 }
 0xb53   : > { %v1413_v27 = vpop.xlane.xlu0 %1412 }
 0xb54   : > { %2468 = vrcp.f32 %v1413_v27 }
 0xb57   : > { %v1416_v28 = vpop.xlane.xlu0 %1415  ;;  %v1419_v29 = vpop.xlane.xlu1 %1418 }
 0xb58   : > { %2470 = vrcp.f32 %v1416_v28 }
 0xb59   : > { %2472 = vrcp.f32 %v1419_v29 }
 0xb5b   : > { %v1429_v30 = vpop.permute.xlu0 %1428  ;;  %v1431_v56 = vpop.permute.xlu1 %1430 }
 0xb5c   : > { %2280 = vmatprep.subr.bf16.mxu1 %v1429_v30  ;;  %v1440_v48 = vsel %vm925_vm5, %v1431_v56, 0 }
 0xb5d   : > { %2281 = vmatpush3.bf16.msra.mxu1 %v1429_v30 }
 0xb5e   : > { %2335 = vmatprep.subr.msk.bf16.mxu1 %vm925_vm5, %v1431_v56  ;;  %v2469_v60 = vpop.eup %2468 }
 0xb5f   : > { %v1423_v52 = vmul.f32 %v2469_v60, %v2463_v2  ;;  %v2393_v42 = vpop.permute.xlu1 %2392  ;;  %v2398_v44 = vpop.permute.xlu0 %2397 }
 0xb60   : > { %v2395_v45 = vunpack.i.h.bf16 %v2393_v42  ;;  %v2394_v46 = vunpack.i.l.bf16 %v2393_v42  ;;  %v2400_v50 = vunpack.i.h.bf16 %v2398_v44  ;;  %v2399_v53 = vunpack.i.l.bf16 %v2398_v44 }
 0xb61   : > { %2283 = vmatpush3.bf16.msra.mxu1 %v1440_v48 }
 0xb62   : > { %v2471_v49 = vpop.eup %2470  ;;  %2288 = vmatprep.subr.bf16.mxu1 %v2408_v35  ;;  %v1527_v57 = vsel %vm811_vm2, %v2801_v58, %v2395_v45  ;;  %v1526_v59 = vsel %vm811_vm2, %v2799_v55, %v2394_v46 }
 0xb63   : > { %v2473_v51 = vpop.eup %2472  ;;  %v1424_v31 = vmul.f32 %v2471_v49, %v2465_v23  ;;  %v1498_v43 = vpop.permute.xlu1 %1497  ;;  %v1530_v7 = vsel %vm1529_vm6, %v1526_v59, %v2399_v53  ;;  %v1531_v8 = vsel %vm1529_vm6, %v1527_v57, %v2400_v50  ;;  %v2141_v57 = vld [vmem:[%s3025_s3] ss:$0 sm:$0xff] }
 0xb64   : > { %v1425_v32 = vmul.f32 %v2473_v51, %v2467_v24  ;;  %v1528_v62 = vsel %vm811_vm2, %v2797_v54, %v1498_v43  ;;  %v2135_v54 = vld [vmem:[%s3023_s22] ss:$0 sm:$0xff] }
 0xb65   : > { %v1426_v33 = vpack.c.bf16 %v1424_v31, %v1423_v52  ;;  %v2410_v52 = vld [vmem:[%s2687_s26] sm:$0xff]   ;;  %v2411_v31 = vld [vmem:[%s2687_s26 + $0x8] sm:$0xff]  }
 0xb66   : > { %v1427_v34 = vpack.c.bf16 %v1425_v32, %v1425_v32  ;;  %2296 = vmatprep.subr.bf16.mxu0 %v2410_v52  ;;  %v2140_v43 = vld [vmem:[%s3024_s27] ss:$0 sm:$0xff] }
 0xb67   : > { %2284 = vmatprep.mubr.msk.bf16.mxu1 %vm878_vm4, %v1426_v33  ;;  %v1510_v47 = vpop.permute.xlu1 %1509  ;;  %2297 = vmatpush3.bf16.msra.mxu0 %v2410_v52 }
 0xb68   : > { %2285 = vmatmul.mubr.msk.bf16.vlgmr.msra.gmra.mrb[8].mxu1 %vm878_vm4, %v1427_v34  ;;  %v1532_v0 = vsel %vm1529_vm6, %v1528_v62, %v1510_v47  ;;  %2298 = vmatprep.subr.bf16.mxu0 %v2411_v31 }
 0xb69   : > { %2289 = vmatpush3.bf16.msra.mxu1 %v2408_v35 }
 0xb6a   : > { %2290 = vmatprep.subr.bf16.mxu1 %v2409_v36 }
 0xb6b   : > { %2299 = vmatpush3.bf16.msra.mxu0 %v2411_v31 }
 0xb6d   : > { %2291 = vmatpush3.bf16.msra.mxu1 %v2409_v36 }
 0xc3b   : > { %v2286_v37 = vpop.f32.mrb[8].mxu1 }
 0xc3c   : > { %1521 = vrot.lane.b32.xlu1 %v2286_v37, %s2539_s20  ;;  %v1476_v38 = vpop.f32.mrb[9].mxu1 }
 0xc3d   : > { %v2287_v39 = vpop.f32.mrb[10].mxu1 }
 0xc3e   : > { %v1479_v40 = vpop.f32.mrb[11].mxu1 }
 0xc3f   : > { %v2401_v41 = vpack.i.bf16 %v1479_v40, %v1476_v38 }
 0xc41   : > { %2402 = vrot.lane.b32.xlu0 %v2401_v41, %s2539_s20 }
 0xcae   : > { %v1522_v61 = vpop.permute.xlu1 %1521 }
 0xcaf   : > { %v1535_v9 = vsel %vm878_vm4, %v1532_v0, %v1522_v61 }
 0xcb0   : > { %v1537_v55 = vpack.c.bf16 %v1535_v9, %v1535_v9  ;;  %v2415_v9 = vld [vmem:[%s2701_s0 + $0x18] sm:$0xff]  }
 0xcb3   : > { %v2403_v63 = vpop.permute.xlu0 %2402 }
 0xcb4   : > { %v2405_v1 = vunpack.i.h.bf16 %v2403_v63  ;;  %v2404_v6 = vunpack.i.l.bf16 %v2403_v63 }
 0xcb6   : > { %v1533_v10 = vsel %vm878_vm4, %v1530_v7, %v2404_v6  ;;  %v1534_v58 = vsel %vm878_vm4, %v1531_v8, %v2405_v1  ;;  %v2412_v6 = vld [vmem:[%s2701_s0] sm:$0xff]   ;;  %v2413_v7 = vld [vmem:[%s2701_s0 + $0x8] sm:$0xff]   ;;  %v2414_v8 = vld [vmem:[%s2701_s0 + $0x10] sm:$0xff]  }
 0xcb7   : > { %v1536_v11 = vpack.c.bf16 %v1534_v58, %v1533_v10  ;;  %2304 = vmatprep.subr.bf16.mxu1 %v2412_v6  ;;  %v2416_v10 = vld [vmem:[%s2701_s0 + $0x20] sm:$0xff]   ;;  %v2417_v58 = vld [vmem:[%s2701_s0 + $0x28] sm:$0xff]  }
 0xcb9   : > { %2292 = vmatprep.mubr.msk.bf16.mxu1 %vm660_vm1, %v1536_v11  ;;  %v2418_v11 = vld [vmem:[%s2701_s0 + $0x30] sm:$0xff]  }
 0xcba   : > { %2293 = vmatmul.mubr.msk.bf16.vlgmr.msra.gmra.mrb[12].mxu1 %vm660_vm1, %v1537_v55  ;;  %v2419_v55 = vld [vmem:[%s2701_s0 + $0x38] sm:$0xff]  }
 0xcbb   : > { %2305 = vmatpush3.bf16.msra.mxu1 %v2412_v6 }
 0xcbc   : > { %2306 = vmatprep.subr.bf16.mxu1 %v2413_v7 }
 0xcbf   : > { %2307 = vmatpush3.bf16.msra.mxu1 %v2413_v7 }
 0xcc0   : > { %2308 = vmatprep.subr.bf16.mxu1 %v2414_v8 }
 0xcc3   : > { %2309 = vmatpush3.bf16.msra.mxu1 %v2414_v8 }
 0xcc4   : > { %2310 = vmatprep.subr.bf16.mxu1 %v2415_v9 }
 0xcc7   : > { %2311 = vmatpush3.bf16.msra.mxu1 %v2415_v9 }
 0xcc8   : > { %2312 = vmatprep.subr.bf16.mxu1 %v2416_v10 }
 0xccb   : > { %2313 = vmatpush3.bf16.msra.mxu1 %v2416_v10 }
 0xccc   : > { %2314 = vmatprep.subr.bf16.mxu1 %v2417_v58 }
 0xccf   : > { %2315 = vmatpush3.bf16.msra.mxu1 %v2417_v58 }
 0xcd0   : > { %2316 = vmatprep.subr.bf16.mxu1 %v2418_v11 }
 0xcd3   : > { %2317 = vmatpush3.bf16.msra.mxu1 %v2418_v11 }
 0xcd4   : > { %2318 = vmatprep.subr.bf16.mxu1 %v2419_v55 }
 0xcd7   : > { %2319 = vmatpush3.bf16.msra.mxu1 %v2419_v55 }
 0xd8d   : > { %v2294_v12 = vpop.f32.mrb[12].mxu1 }
 0xd8e   : > { %v1601_v13 = vpop.f32.mrb[13].mxu1  ;;  %v1610_v14 = vadd.f32 %v2294_v12, %v2135_v54 }
 0xd8f   : > { %v1602_v15 = vadd.f32 %v2135_v54, %v1601_v13  ;;  %v2295_v16 = vpop.f32.mrb[14].mxu1 }
 0xd90   : > { %v1604_v17 = vpop.f32.mrb[15].mxu1  ;;  %v2911_v20 = vadd.f32 %v1610_v14, %v2716_v4 }
 0xd91   : > { %v2908_v18 = vadd.f32 %v1602_v15, %v2713_v3  ;;  %v1605_v19 = vadd.f32 %v2135_v54, %v1604_v17  ;;  %v2142_v54 = vld [vmem:[%s631_s13] ss:$0 sm:$0xff] }
 0xd92   : > { %v1624_v23 = vsel %vm660_vm1, %v2911_v20, 0.0 }
 0xd93   : > { %v2914_v21 = vadd.f32 %v1605_v19, %v2719_v5  ;;  %v1618_v2 = vsel %vm660_vm1, %v2908_v18, 0.0 }
 0xd94   : > { %1619 = vadd.xlane.f32.xlu0 %v1618_v2 }
 0xd95   : > { %v1621_v22 = vsel %vm660_vm1, %v2914_v21, 0.0 }
 0xd96   : > { %1622 = vadd.xlane.f32.xlu1 %v1621_v22 }
 0xd98   : > { %1625 = vadd.xlane.f32.xlu0 %v1624_v23 }
 0xe21   : > { %v1620_v3 = vpop.xlane.xlu0 %1619 }
 0xe22   : > { %v1627_v24 = vmul.f32 0.03125, %v1620_v3 }
 0xe23   : > { %v1623_v25 = vpop.xlane.xlu1 %1622 }
 0xe24   : > { %v1630_v4 = vsub.f32 %v2908_v18, %v1627_v24  ;;  %v1628_v5 = vmul.f32 0.03125, %v1623_v25 }
 0xe25   : > { %v1626_v26 = vpop.xlane.xlu0 %1625 }
 0xe26   : > { %v1631_v27 = vsub.f32 %v2914_v21, %v1628_v5  ;;  %v1629_v28 = vmul.f32 0.03125, %v1626_v26  ;;  %v1633_v29 = vmul.f32 %v1630_v4, %v1630_v4 }
 0xe28   : > { %v1632_v30 = vsub.f32 %v2911_v20, %v1629_v28  ;;  %v1636_v56 = vsel %vm660_vm1, %v1633_v29, 0.0  ;;  %v1634_v60 = vmul.f32 %v1631_v27, %v1631_v27 }
 0xe29   : > { %1637 = vadd.xlane.f32.xlu0 %v1636_v56 }
 0xe2a   : > { %v1635_v48 = vmul.f32 %v1632_v30, %v1632_v30  ;;  %v1639_v49 = vsel %vm660_vm1, %v1634_v60, 0.0 }
 0xe2c   : > { %v1642_v51 = vsel %vm660_vm1, %v1635_v48, 0.0 }
 0xe2d   : > { %1640 = vadd.xlane.f32.xlu0 %v1639_v49  ;;  %1643 = vadd.xlane.f32.xlu1 %v1642_v51 }
 0xeb6   : > { %v1638_v32 = vpop.xlane.xlu0 %1637 }
 0xeb7   : > { %v1645_v33 = vmul.f32 0.03125, %v1638_v32 }
 0xeb9   : > { %v1648_v34 = vadd.f32 1e-05, %v1645_v33 }
 0xeba   : > { %v1644_v35 = vpop.xlane.xlu1 %1643  ;;  %v1641_v36 = vpop.xlane.xlu0 %1640 }
 0xebb   : > { %2474 = vrsqrt.f32 %v1648_v34  ;;  %v1647_v37 = vmul.f32 0.03125, %v1644_v35  ;;  %v1646_v38 = vmul.f32 0.03125, %v1641_v36 }
 0xebd   : > { %v1650_v39 = vadd.f32 1e-05, %v1647_v37  ;;  %v1649_v40 = vadd.f32 1e-05, %v1646_v38 }
 0xebf   : > { %2476 = vrsqrt.f32 %v1650_v39 }
 0xec0   : > { %2478 = vrsqrt.f32 %v1649_v40 }
 0xec5   : > { %v2475_v41 = vpop.eup %2474 }
 0xec6   : > { %v1654_v42 = vmul.f32 %v2475_v41, %v1630_v4  ;;  %v2147_v41 = vld [vmem:[%s639_s23] ss:$0 sm:$0xff] }
 0xec8   : > { %v1664_v50 = vmul.f32 %v2140_v43, %v1654_v42 }
 0xec9   : > { %v2477_v44 = vpop.eup %2476 }
 0xeca   : > { %v2479_v45 = vpop.eup %2478  ;;  %v1656_v46 = vmul.f32 %v2477_v44, %v1632_v30  ;;  %v1674_v62 = vadd.f32 %v2141_v57, %v1664_v50 }
 0xecb   : > { %v1655_v47 = vmul.f32 %v2479_v45, %v1631_v27 }
 0xecc   : > { %v1666_v53 = vmul.f32 %v2140_v43, %v1656_v46 }
 0xecd   : > { %v1665_v59 = vmul.f32 %v2140_v43, %v1655_v47 }
 0xece   : > { %v1676_v61 = vadd.f32 %v2141_v57, %v1666_v53 }
 0xecf   : > { %v1675_v63 = vadd.f32 %v2141_v57, %v1665_v59 }
 0xed0   : > { %v1678_v0 = vpack.c.bf16 %v1676_v61, %v1676_v61 }
 0xed1   : > { %v1677_v1 = vpack.c.bf16 %v1675_v63, %v1674_v62 }
 0xed3   : > { %2300 = vmatprep.mubr.msk.bf16.mxu0 %vm660_vm1, %v1677_v1 }
 0xed4   : > { %2301 = vmatmul.mubr.msk.bf16.vlgmr.msra.gmra.mrb[24].mxu0 %vm660_vm1, %v1678_v0 }
 0xfa7   : > { %v2302_v12 = vpop.f32.mrb[24].mxu0 }
 0xfa8   : > { %v1751_v13 = vadd.f32 %v2302_v12, %v2142_v54  ;;  %v1742_v14 = vpop.f32.mrb[25].mxu0 }
 0xfa9   : > { %v1743_v15 = vadd.f32 %v2142_v54, %v1742_v14  ;;  %v2303_v16 = vpop.f32.mrb[26].mxu0 }
 0xfaa   : > { %v1758_v17 = vmul.f32 %v1751_v13, %v1751_v13  ;;  %v1745_v19 = vpop.f32.mrb[27].mxu0 }
 0xfab   : > { %v1756_v2 = vmul.f32 %v1743_v15, %v1743_v15  ;;  %v1746_v22 = vadd.f32 %v2142_v54, %v1745_v19 }
 0xfac   : > { %v1761_v23 = vmul.f32 %v1758_v17, %v1751_v13 }
 0xfad   : > { %v1759_v3 = vmul.f32 %v1756_v2, %v1743_v15  ;;  %v1757_v24 = vmul.f32 %v1746_v22, %v1746_v22 }
 0xfae   : > { %v1764_v25 = vmul.f32 0.044715, %v1761_v23 }
 0xfaf   : > { %v1762_v4 = vmul.f32 0.044715, %v1759_v3  ;;  %v1760_v5 = vmul.f32 %v1757_v24, %v1746_v22 }
 0xfb0   : > { %v1767_v26 = vadd.f32 %v1764_v25, %v1751_v13 }
 0xfb1   : > { %v1765_v27 = vadd.f32 %v1762_v4, %v1743_v15  ;;  %v1763_v28 = vmul.f32 0.044715, %v1760_v5 }
 0xfb2   : > { %v1770_v29 = vmul.f32 0.7978846, %v1767_v26 }
 0xfb3   : > { %v1768_v30 = vmul.f32 0.7978846, %v1765_v27  ;;  %v1766_v56 = vadd.f32 %v1763_v28, %v1746_v22 }
 0xfb4   : > { %2480 = vtanh.f32 %v1770_v29 }
 0xfb5   : > { %2482 = vtanh.f32 %v1768_v30  ;;  %v1769_v60 = vmul.f32 0.7978846, %v1766_v56 }
 0xfb7   : > { %2484 = vtanh.f32 %v1769_v60 }
 0xfbe   : > { %v2481_v48 = vpop.eup %2480 }
 0xfbf   : > { %v2483_v49 = vpop.eup %2482  ;;  %v1776_v51 = vadd.f32 1.0, %v2481_v48 }
 0xfc0   : > { %v1774_v52 = vadd.f32 1.0, %v2483_v49 }
 0xfc1   : > { %v2485_v31 = vpop.eup %2484  ;;  %v1779_v32 = vmul.f32 0.5, %v1776_v51 }
 0xfc2   : > { %v1775_v33 = vadd.f32 1.0, %v2485_v31  ;;  %v1777_v34 = vmul.f32 0.5, %v1774_v52 }
 0xfc3   : > { %v1782_v36 = vmul.f32 %v1779_v32, %v1751_v13 }
 0xfc4   : > { %v1778_v35 = vmul.f32 0.5, %v1775_v33  ;;  %v1780_v37 = vmul.f32 %v1777_v34, %v1743_v15 }
 0xfc5   : > { %v1784_v40 = vpack.c.bf16 %v1782_v36, %v1782_v36 }
 0xfc6   : > { %v1781_v38 = vmul.f32 %v1778_v35, %v1746_v22 }
 0xfc8   : > { %v1783_v39 = vpack.c.bf16 %v1781_v38, %v1780_v37 }
 0xfca   : > { %2320 = vmatprep.mubr.bf16.mxu1 %v1783_v39 }
 0xfcb   : > { %2321 = vmatmul.mubr.bf16.vlgmr.msra.gmra.mrb[16].mxu1 %v1784_v40 }
0x109e   : > { %v2322_v42 = vpop.f32.mrb[16].mxu1 }
0x109f   : > { %v1899_v43 = vadd.f32 %v2322_v42, %v2147_v41  ;;  %v1890_v44 = vpop.f32.mrb[17].mxu1 }
0x10a0   : > { %v1891_v45 = vadd.f32 %v2147_v41, %v1890_v44  ;;  %v2323_v46 = vpop.f32.mrb[18].mxu1 }
0x10a1   : > { %v1906_v47 = vadd.f32 %v1899_v43, %v2911_v20  ;;  %v1893_v50 = vpop.f32.mrb[19].mxu1 }
0x10a2   : > { %v1904_v53 = vadd.f32 %v1891_v45, %v2908_v18  ;;  %v1894_v57 = vadd.f32 %v2147_v41, %v1893_v50 }
0x10a3   : > { %1909 = vst.msk [vmem:[%s2706_s2 + $0x10] sm:$0xff] %vm660_vm1, %v1906_v47 }
0x10a4   : > { %1907 = vst.msk [vmem:[%s2706_s2] sm:$0xff] %vm660_vm1, %v1904_v53  ;;  %v1905_v59 = vadd.f32 %v1894_v57, %v2914_v21 }
0x10a6   : > { %1908 = vst.msk [vmem:[%s2706_s2 + $0x8] sm:$0xff] %vm660_vm1, %v1905_v59 }
0x10a7 PF: > { %s3026_s15 = sld [smem:[#allocation5_spill]]  ;;  %s3027_s25 = sld [smem:[#allocation3_spill]] }
0x10a8   : > { %s3028_s26 = sld [smem:[#allocation4_spill]]  ;;  %s3029_s27 = sld [smem:[#allocation6_spill]] }
0x10a9   : > { %s3030_s28 = sld [smem:[#allocation7_spill]] }
0x10ad   : > { %s23_s29 = sadd.s32 1, %s3026_s15  }
0x10ae   : > { %p20_p8 = scmp.ge.s32.totalorder %s23_s29, 6  }
0x10b0   :  { %22 = sbr.rel (!%p20_p8) target bundleno = 6 (0x6), region = 142 }

</bundles_post_ra>
